<compile_context>
chip_gen: v6e
topology: v6e:2x2x1
jax: 0.10.0
libtpu: 0.0.40
codegen_flags: <defaults>
</compile_context>

<pallas_src>
import functools

import jax
import jax.numpy as jnp
import numpy as np
from jax.experimental import pallas as pl
from jax.experimental.pallas import tpu as pltpu

KSIZE = 7
PAD = 3


def _round_up(v, m):
    return (v + m - 1) // m * m


def _stable_sigmoid(x):
    # Numerically stable sigmoid: never exponentiates a positive argument.
    z = jnp.exp(-jnp.abs(x))
    r = 1.0 / (1.0 + z)
    return jnp.where(x >= 0, r, z * r)


def cbam_kernel(x_ref, w1_ref, w2_ref, ws_ref, o_ref, ap_ref, mp_ref, *, width):
    # x_ref : (Bb, C, H*W)  VMEM  lane-dense input block
    # w1_ref: (Cr, C)       VMEM  fc1 weight (1x1 conv, squeezed)
    # w2_ref: (C, Cr)       VMEM  fc2 weight (1x1 conv, squeezed)
    # ws_ref: (2*7*7,)      SMEM  spatial conv weight, flat [c*49 + kh*7 + kw]
    # o_ref : (Bb, C, H*W)  VMEM
    # ap_ref, mp_ref: (1, PADLEN) VMEM flat zero-padded avg/max spatial maps
    Bb, C, HW = x_ref.shape
    W = width
    PADLEN = ap_ref.shape[-1]
    OFF = (PADLEN - HW) // 2            # lane offset of the map interior (128-aligned)
    base = OFF - PAD * (W + 1)          # lane offset of tap (kh=0, kw=0)

    w1 = w1_ref[...].astype(jnp.float32)            # (Cr, C)
    w2 = w2_ref[...].astype(jnp.float32)            # (C, Cr)

    # Column coordinate of every flat position p = h*W + w  ->  w = p % W.
    w_pos = jax.lax.broadcasted_iota(jnp.int32, (1, HW), 1) % W
    # Column-validity mask per kw (rows out of range read the zero halo instead).
    col_ok = [jnp.logical_and(w_pos >= PAD - kw, w_pos < W + PAD - kw)
              for kw in range(KSIZE)]
    # Selector used to build the fused (C, 2) = [avg | max] pooled operand.
    is_col0 = jax.lax.broadcasted_iota(jnp.int32, (C, 2), 1) == 0

    # Zero only the halo of the padded maps.  Done every grid step (not just
    # step 0) because the batch axis is "parallel" and may be sharded across
    # TensorCores, each owning its own scratch.  The interior is rewritten below.
    halo = jnp.zeros((1, OFF), jnp.float32)
    ap_ref[:, :OFF] = halo
    ap_ref[:, OFF + HW:] = halo
    mp_ref[:, :OFF] = halo
    mp_ref[:, OFF + HW:] = halo

    for b in range(Bb):                               # static unroll over the batch block
        xb = x_ref[b].astype(jnp.float32)             # (C, HW), lane-dense

        # ---------------- Channel attention (fused avg/max branches) --------
        avg_col = jnp.mean(xb, axis=1, keepdims=True)           # (C, 1) AdaptiveAvgPool2d(1)
        max_col = jnp.max(xb, axis=1, keepdims=True)            # (C, 1) AdaptiveMaxPool2d(1)
        pooled = jnp.where(is_col0, avg_col, max_col)           # (C, 2)
        hidden = jnp.maximum(
            jnp.dot(w1, pooled, preferred_element_type=jnp.float32), 0.0)   # (Cr, 2)
        logits = jnp.sum(
            jnp.dot(w2, hidden, preferred_element_type=jnp.float32),
            axis=1, keepdims=True)                              # (C, 1) = fc(avg)+fc(max)
        y_c = _stable_sigmoid(logits)                           # (C, 1)

        # ---------------- Spatial attention ---------------------------------
        avg_sp = jnp.mean(xb, axis=0, keepdims=True)            # (1, HW) mean over channels
        max_sp = jnp.max(xb, axis=0, keepdims=True)             # (1, HW) max over channels
        ap_ref[:, OFF:OFF + HW] = avg_sp                        # 128-aligned interior store
        mp_ref[:, OFF:OFF + HW] = max_sp

        # 7x7 conv over the 2-channel (avg, max) map on the flat layout:
        # tap (kh, kw) for output p reads padded[base + kh*W + kw + p]; column
        # wrap-around between rows is killed by col_ok[kw], row overflow lands
        # in the zero halo.  Reads are lane-dense (1, HW) windows.
        acc = jnp.zeros((1, HW), jnp.float32)
        for kw in range(KSIZE):
            part = jnp.zeros((1, HW), jnp.float32)
            for kh in range(KSIZE):
                start = base + kh * W + kw
                w_a = ws_ref[0 * KSIZE * KSIZE + kh * KSIZE + kw]
                w_m = ws_ref[1 * KSIZE * KSIZE + kh * KSIZE + kw]
                part = part + w_a * ap_ref[:, start:start + HW] \
                            + w_m * mp_ref[:, start:start + HW]
            acc = acc + jnp.where(col_ok[kw], part, 0.0)
        y_s = _stable_sigmoid(acc)                              # (1, HW)

        # ---------------- Fused combine:  x_ca + x_sa = x * (2 + y_c + y_s) --
        o_ref[b] = (xb * ((y_c + 2.0) + y_s)).astype(o_ref.dtype)


def cbam_pallas(x, w1, w2, ws, *, batch_block=1):
    """x: (B,C,H,W); w1: (Cr,C); w2: (C,Cr); ws: (1,2,7,7). Returns (B,C,H,W)."""
    B, C, H, W = x.shape
    Cr = w1.shape[0]
    HW = H * W

    Bb = batch_block if (batch_block > 0 and B % batch_block == 0) else 1
    grid = (B // Bb,)

    OFF = _round_up(PAD * (W + 1), 128)         # 128-aligned halo width (>= 3*(W+1))
    PADLEN = 2 * OFF + HW

    x_flat = x.reshape(B, C, HW)                # lane-dense layout for the kernel
    ws_flat = ws.reshape(-1).astype(jnp.float32)

    # VMEM budget: double-buffered input + output blocks, weights, padded scratch.
    itemsize = jnp.dtype(x.dtype).itemsize
    block_bytes = Bb * C * HW * itemsize
    scratch_bytes = 2 * 8 * _round_up(PADLEN, 128) * 4
    weight_bytes = 2 * (2 * Cr * C) * 4
    vmem_limit = int(min(64 * 1024 * 1024,
                         max(16 * 1024 * 1024,
                             4 * block_bytes + scratch_bytes + weight_bytes + (2 << 20))))
    # TODO(synk): for production shapes where the per-step (Bb,C,H*W) block blows
    # the v7x VMEM budget (64 MiB physical / 32 MiB scoped), add an H-tiling grid axis.

    kernel = functools.partial(cbam_kernel, width=W)
    out_flat = pl.pallas_call(
        kernel,
        out_shape=jax.ShapeDtypeStruct((B, C, HW), x.dtype),
        grid_spec=pltpu.PrefetchScalarGridSpec(
            num_scalar_prefetch=0,
            grid=grid,
            in_specs=[
                pl.BlockSpec((Bb, C, HW), lambda b: (b, 0, 0)),
                pl.BlockSpec((Cr, C), lambda b: (0, 0)),
                pl.BlockSpec((C, Cr), lambda b: (0, 0)),
                pl.BlockSpec(memory_space=pltpu.MemorySpace.SMEM),
            ],
            out_specs=pl.BlockSpec((Bb, C, HW), lambda b: (b, 0, 0)),
            scratch_shapes=[
                pltpu.VMEM((1, PADLEN), jnp.float32),
                pltpu.VMEM((1, PADLEN), jnp.float32),
            ],
        ),
        compiler_params=pltpu.CompilerParams(
            dimension_semantics=("parallel",),      # disjoint output blocks per batch step
            vmem_limit_bytes=vmem_limit),
    )(x_flat, w1, w2, ws_flat)

    return out_flat.reshape(B, C, H, W)


def cbam_reference(x, w1, w2, ws):
    """Pure-JAX reference identical to the PyTorch module."""
    avg = jnp.mean(x, axis=(2, 3))                          # (B, C)
    mx = jnp.max(x, axis=(2, 3))                            # (B, C)

    def fc(v):
        return jnp.maximum(v @ w1.T, 0.0) @ w2.T

    y_c = jax.nn.sigmoid(fc(avg) + fc(mx))                  # (B, C)
    x_ca = x * (1.0 + y_c[:, :, None, None])

    avg_s = jnp.mean(x, axis=1, keepdims=True)
    max_s = jnp.max(x, axis=1, keepdims=True)
    inp = jnp.concatenate([avg_s, max_s], axis=1)           # (B, 2, H, W)
    s = jax.lax.conv_general_dilated(
        inp, ws, window_strides=(1, 1), padding=((PAD, PAD), (PAD, PAD)),
        dimension_numbers=("NCHW", "OIHW", "NCHW"))
    y_s = jax.nn.sigmoid(s)                                 # (B, 1, H, W)
    x_sa = x * (1.0 + y_s)
    return x_ca + x_sa


if __name__ == "__main__":
    B, C, H, W = 2, 32, 16, 16
    ratio = 16
    Cr = C // ratio

    key = jax.random.PRNGKey(0)
    kx, k1, k2, k3 = jax.random.split(key, 4)
    x = jax.random.normal(kx, (B, C, H, W), jnp.float32)
    w1 = jax.random.normal(k1, (Cr, C), jnp.float32) * 0.1        # fc1: Conv2d(C, C//r, 1)
    w2 = jax.random.normal(k2, (C, Cr), jnp.float32) * 0.1        # fc2: Conv2d(C//r, C, 1)
    ws = jax.random.normal(k3, (1, 2, KSIZE, KSIZE), jnp.float32) * 0.1  # SA 7x7 conv

    out = jax.block_until_ready(cbam_pallas(x, w1, w2, ws))
    ref = jax.block_until_ready(cbam_reference(x, w1, w2, ws))
    np.testing.assert_allclose(np.asarray(out), np.asarray(ref), rtol=1e-4, atol=1e-4)
    print("KERNEL_OK")
</pallas_src>

<mosaic_0001>
module attributes {stable_mosaic.version = 11 : i64} {
  func.func @cbam_kernel(%arg0: i32, %arg1: memref<1x32x256xf32, #tpu.memory_space<vmem>>, %arg2: memref<2x32xf32, #tpu.memory_space<vmem>>, %arg3: memref<32x2xf32, #tpu.memory_space<vmem>>, %arg4: memref<98xf32, #tpu.memory_space<smem>>, %arg5: memref<1x32x256xf32, #tpu.memory_space<vmem>>, %arg6: memref<1x512xf32, #tpu.memory_space<vmem>>, %arg7: memref<1x512xf32, #tpu.memory_space<vmem>>) attributes {dimension_semantics = [#tpu.dimension_semantics<parallel>], iteration_bounds = array<i64: 2>, scalar_prefetch = 0 : i64, scratch_operands = 2 : i64, tpu.core_type = #tpu.core_type<tc>, window_params = [{transform_indices = @transform_0, window_bounds = array<i64: 1, 32, 256>}, {pipeline_mode = #tpu.pipeline_mode<synchronous>, transform_indices = @transform_1, window_bounds = array<i64: 2, 32>}, {pipeline_mode = #tpu.pipeline_mode<synchronous>, transform_indices = @transform_2, window_bounds = array<i64: 32, 2>}, {transform_indices = @transform_3, window_bounds = array<i64: 98>}, {transform_indices = @transform_4, window_bounds = array<i64: 1, 32, 256>}]} {
    %c0 = arith.constant 0 : index
    %c0_0 = arith.constant 0 : index
    %0 = vector.load %arg2[%c0, %c0_0] : memref<2x32xf32, #tpu.memory_space<vmem>>, vector<2x32xf32>
    %c0_1 = arith.constant 0 : index
    %c0_2 = arith.constant 0 : index
    %1 = vector.load %arg3[%c0_1, %c0_2] : memref<32x2xf32, #tpu.memory_space<vmem>>, vector<32x2xf32>
    %2 = tpu.iota {dimensions = array<i32: 1>} : vector<1x256xi32>
    %c16_i32 = arith.constant 16 : i32
    %c0_i32 = arith.constant 0 : i32
    %3 = arith.cmpi eq, %c16_i32, %c0_i32 : i32
    %c1_i32 = arith.constant 1 : i32
    %4 = arith.select %3, %c1_i32, %c16_i32 : i32
    %5 = vector.broadcast %4 : i32 to vector<1x256xi32>
    %6 = arith.remsi %2, %5 : vector<1x256xi32>
    %c0_i32_3 = arith.constant 0 : i32
    %7 = vector.broadcast %c0_i32_3 : i32 to vector<1x256xi32>
    %8 = arith.cmpi ne, %6, %7 : vector<1x256xi32>
    %c0_i32_4 = arith.constant 0 : i32
    %9 = vector.broadcast %c0_i32_4 : i32 to vector<1x256xi32>
    %10 = arith.cmpi slt, %6, %9 : vector<1x256xi32>
    %c0_i32_5 = arith.constant 0 : i32
    %11 = arith.cmpi slt, %4, %c0_i32_5 : i32
    %12 = vector.broadcast %11 : i1 to vector<1x256xi1>
    %13 = vector.broadcast %12 : vector<1x256xi1> to vector<1x256xi1>
    %14 = arith.xori %10, %13 : vector<1x256xi1>
    %15 = arith.andi %14, %8 : vector<1x256xi1>
    %16 = vector.broadcast %4 : i32 to vector<1x256xi32>
    %17 = arith.addi %6, %16 : vector<1x256xi32>
    %18 = arith.select %15, %17, %6 : vector<1x256xi1>, vector<1x256xi32>
    %c3_i32 = arith.constant 3 : i32
    %19 = vector.broadcast %c3_i32 : i32 to vector<1x256xi32>
    %20 = arith.cmpi sge, %18, %19 : vector<1x256xi32>
    %c19_i32 = arith.constant 19 : i32
    %21 = vector.broadcast %c19_i32 : i32 to vector<1x256xi32>
    %22 = arith.cmpi slt, %18, %21 : vector<1x256xi32>
    %23 = arith.andi %20, %22 : vector<1x256xi1>
    %c2_i32 = arith.constant 2 : i32
    %24 = vector.broadcast %c2_i32 : i32 to vector<1x256xi32>
    %25 = arith.cmpi sge, %18, %24 : vector<1x256xi32>
    %c18_i32 = arith.constant 18 : i32
    %26 = vector.broadcast %c18_i32 : i32 to vector<1x256xi32>
    %27 = arith.cmpi slt, %18, %26 : vector<1x256xi32>
    %28 = arith.andi %25, %27 : vector<1x256xi1>
    %c1_i32_6 = arith.constant 1 : i32
    %29 = vector.broadcast %c1_i32_6 : i32 to vector<1x256xi32>
    %30 = arith.cmpi sge, %18, %29 : vector<1x256xi32>
    %c17_i32 = arith.constant 17 : i32
    %31 = vector.broadcast %c17_i32 : i32 to vector<1x256xi32>
    %32 = arith.cmpi slt, %18, %31 : vector<1x256xi32>
    %33 = arith.andi %30, %32 : vector<1x256xi1>
    %c0_i32_7 = arith.constant 0 : i32
    %34 = vector.broadcast %c0_i32_7 : i32 to vector<1x256xi32>
    %35 = arith.cmpi sge, %18, %34 : vector<1x256xi32>
    %c16_i32_8 = arith.constant 16 : i32
    %36 = vector.broadcast %c16_i32_8 : i32 to vector<1x256xi32>
    %37 = arith.cmpi slt, %18, %36 : vector<1x256xi32>
    %38 = arith.andi %35, %37 : vector<1x256xi1>
    %c-1_i32 = arith.constant -1 : i32
    %39 = vector.broadcast %c-1_i32 : i32 to vector<1x256xi32>
    %40 = arith.cmpi sge, %18, %39 : vector<1x256xi32>
    %c15_i32 = arith.constant 15 : i32
    %41 = vector.broadcast %c15_i32 : i32 to vector<1x256xi32>
    %42 = arith.cmpi slt, %18, %41 : vector<1x256xi32>
    %43 = arith.andi %40, %42 : vector<1x256xi1>
    %c-2_i32 = arith.constant -2 : i32
    %44 = vector.broadcast %c-2_i32 : i32 to vector<1x256xi32>
    %45 = arith.cmpi sge, %18, %44 : vector<1x256xi32>
    %c14_i32 = arith.constant 14 : i32
    %46 = vector.broadcast %c14_i32 : i32 to vector<1x256xi32>
    %47 = arith.cmpi slt, %18, %46 : vector<1x256xi32>
    %48 = arith.andi %45, %47 : vector<1x256xi1>
    %c-3_i32 = arith.constant -3 : i32
    %49 = vector.broadcast %c-3_i32 : i32 to vector<1x256xi32>
    %50 = arith.cmpi sge, %18, %49 : vector<1x256xi32>
    %c13_i32 = arith.constant 13 : i32
    %51 = vector.broadcast %c13_i32 : i32 to vector<1x256xi32>
    %52 = arith.cmpi slt, %18, %51 : vector<1x256xi32>
    %53 = arith.andi %50, %52 : vector<1x256xi1>
    %54 = tpu.iota {dimensions = array<i32: 1>} : vector<32x2xi32>
    %c0_i32_9 = arith.constant 0 : i32
    %55 = vector.broadcast %c0_i32_9 : i32 to vector<32x2xi32>
    %56 = arith.cmpi eq, %54, %55 : vector<32x2xi32>
    %cst = arith.constant 0.000000e+00 : f32
    %57 = vector.broadcast %cst : f32 to vector<1x128xf32>
    %c0_10 = arith.constant 0 : index
    %c0_11 = arith.constant 0 : index
    %58 = vector.load %arg6[%c0_10, %c0_11] : memref<1x512xf32, #tpu.memory_space<vmem>>, vector<1x128xf32>
    tpu.vector_store %arg6[%c0_10, %c0_11], %57 {strides = array<i32>} : memref<1x512xf32, #tpu.memory_space<vmem>>, vector<1x128xf32>,
    %c0_12 = arith.constant 0 : index
    %c384 = arith.constant 384 : index
    %59 = vector.load %arg6[%c0_12, %c384] : memref<1x512xf32, #tpu.memory_space<vmem>>, vector<1x128xf32>
    tpu.vector_store %arg6[%c0_12, %c384], %57 {strides = array<i32>} : memref<1x512xf32, #tpu.memory_space<vmem>>, vector<1x128xf32>,
    %c0_13 = arith.constant 0 : index
    %c0_14 = arith.constant 0 : index
    %60 = vector.load %arg7[%c0_13, %c0_14] : memref<1x512xf32, #tpu.memory_space<vmem>>, vector<1x128xf32>
    tpu.vector_store %arg7[%c0_13, %c0_14], %57 {strides = array<i32>} : memref<1x512xf32, #tpu.memory_space<vmem>>, vector<1x128xf32>,
    %c0_15 = arith.constant 0 : index
    %c384_16 = arith.constant 384 : index
    %61 = vector.load %arg7[%c0_15, %c384_16] : memref<1x512xf32, #tpu.memory_space<vmem>>, vector<1x128xf32>
    tpu.vector_store %arg7[%c0_15, %c384_16], %57 {strides = array<i32>} : memref<1x512xf32, #tpu.memory_space<vmem>>, vector<1x128xf32>,
    %c0_17 = arith.constant 0 : index
    %c0_18 = arith.constant 0 : index
    %c0_19 = arith.constant 0 : index
    %62 = vector.load %arg1[%c0_17, %c0_18, %c0_19] : memref<1x32x256xf32, #tpu.memory_space<vmem>>, vector<1x32x256xf32>
    %63 = vector.shape_cast %62 : vector<1x32x256xf32> to vector<32x256xf32>
    %cst_20 = arith.constant dense<0.000000e+00> : vector<32xf32>
    %64 = vector.multi_reduction <add>, %63, %cst_20 [1] : vector<32x256xf32> to vector<32xf32>
    %65 = vector.shape_cast %64 : vector<32xf32> to vector<32x1xf32>
    %cst_21 = arith.constant 2.560000e+02 : f32
    %66 = vector.broadcast %cst_21 : f32 to vector<32x1xf32>
    %67 = arith.divf %65, %66 : vector<32x1xf32>
    %cst_22 = arith.constant dense<0xFF800000> : vector<32xf32>
    %68 = vector.multi_reduction <maximumf>, %63, %cst_22 [1] : vector<32x256xf32> to vector<32xf32>
    %69 = vector.shape_cast %68 : vector<32xf32> to vector<32x1xf32>
    %70 = vector.shape_cast %67 : vector<32x1xf32> to vector<32x1xf32>
    %71 = vector.broadcast %70 : vector<32x1xf32> to vector<32x2xf32>
    %72 = vector.shape_cast %69 : vector<32x1xf32> to vector<32x1xf32>
    %73 = vector.broadcast %72 : vector<32x1xf32> to vector<32x2xf32>
    %74 = arith.select %56, %71, %73 : vector<32x2xi1>, vector<32x2xf32>
    %cst_23 = arith.constant dense<0.000000e+00> : vector<2x2xf32>
    %75 = tpu.matmul %0, %74, %cst_23 {dimension_numbers = #tpu.dot_dimension_numbers<[1], [0], [0], [1], [0, 0, 1, 1], [], []>} : vector<2x32xf32>, vector<32x2xf32>, vector<2x2xf32> -> vector<2x2xf32>
    %cst_24 = arith.constant 0.000000e+00 : f32
    %76 = vector.broadcast %cst_24 : f32 to vector<2x2xf32>
    %77 = arith.maximumf %75, %76 : vector<2x2xf32>
    %cst_25 = arith.constant dense<0.000000e+00> : vector<32x2xf32>
    %78 = tpu.matmul %1, %77, %cst_25 {dimension_numbers = #tpu.dot_dimension_numbers<[1], [0], [0], [1], [0, 0, 1, 1], [], []>} : vector<32x2xf32>, vector<2x2xf32>, vector<32x2xf32> -> vector<32x2xf32>
    %cst_26 = arith.constant dense<0.000000e+00> : vector<32xf32>
    %79 = vector.multi_reduction <add>, %78, %cst_26 [1] : vector<32x2xf32> to vector<32xf32>
    %80 = vector.shape_cast %79 : vector<32xf32> to vector<32x1xf32>
    %81 = math.absf %80 : vector<32x1xf32>
    %cst_27 = arith.constant 0.000000e+00 : f32
    %82 = vector.broadcast %cst_27 : f32 to vector<32x1xf32>
    %83 = arith.subf %82, %81 : vector<32x1xf32>
    %84 = math.exp %83 : vector<32x1xf32>
    %cst_28 = arith.constant 1.000000e+00 : f32
    %85 = vector.broadcast %cst_28 : f32 to vector<32x1xf32>
    %86 = arith.addf %85, %84 : vector<32x1xf32>
    %cst_29 = arith.constant 1.000000e+00 : f32
    %87 = vector.broadcast %cst_29 : f32 to vector<32x1xf32>
    %88 = arith.divf %87, %86 : vector<32x1xf32>
    %cst_30 = arith.constant 0.000000e+00 : f32
    %89 = vector.broadcast %cst_30 : f32 to vector<32x1xf32>
    %90 = arith.cmpf oge, %80, %89 : vector<32x1xf32>
    %91 = arith.mulf %84, %88 : vector<32x1xf32>
    %92 = arith.select %90, %88, %91 : vector<32x1xi1>, vector<32x1xf32>
    %cst_31 = arith.constant dense<0.000000e+00> : vector<256xf32>
    %93 = vector.multi_reduction <add>, %63, %cst_31 [0] : vector<32x256xf32> to vector<256xf32>
    %94 = vector.shape_cast %93 : vector<256xf32> to vector<1x256xf32>
    %cst_32 = arith.constant 3.200000e+01 : f32
    %95 = vector.broadcast %cst_32 : f32 to vector<1x256xf32>
    %96 = arith.divf %94, %95 : vector<1x256xf32>
    %cst_33 = arith.constant dense<0xFF800000> : vector<256xf32>
    %97 = vector.multi_reduction <maximumf>, %63, %cst_33 [0] : vector<32x256xf32> to vector<256xf32>
    %98 = vector.shape_cast %97 : vector<256xf32> to vector<1x256xf32>
    %c0_34 = arith.constant 0 : index
    %c128 = arith.constant 128 : index
    %99 = vector.load %arg6[%c0_34, %c128] : memref<1x512xf32, #tpu.memory_space<vmem>>, vector<1x256xf32>
    tpu.vector_store %arg6[%c0_34, %c128], %96 {strides = array<i32>} : memref<1x512xf32, #tpu.memory_space<vmem>>, vector<1x256xf32>,
    %c0_35 = arith.constant 0 : index
    %c128_36 = arith.constant 128 : index
    %100 = vector.load %arg7[%c0_35, %c128_36] : memref<1x512xf32, #tpu.memory_space<vmem>>, vector<1x256xf32>
    tpu.vector_store %arg7[%c0_35, %c128_36], %98 {strides = array<i32>} : memref<1x512xf32, #tpu.memory_space<vmem>>, vector<1x256xf32>,
    %cst_37 = arith.constant 0.000000e+00 : f32
    %101 = vector.broadcast %cst_37 : f32 to vector<1x256xf32>
    %cst_38 = arith.constant 0.000000e+00 : f32
    %102 = vector.broadcast %cst_38 : f32 to vector<1x256xf32>
    %c0_39 = arith.constant 0 : index
    %103 = memref.load %arg4[%c0_39] : memref<98xf32, #tpu.memory_space<smem>>
    %c49 = arith.constant 49 : index
    %104 = memref.load %arg4[%c49] : memref<98xf32, #tpu.memory_space<smem>>
    %c0_40 = arith.constant 0 : index
    %c77 = arith.constant 77 : index
    %105 = vector.load %arg6[%c0_40, %c77] : memref<1x512xf32, #tpu.memory_space<vmem>>, vector<1x256xf32>
    %106 = vector.broadcast %103 : f32 to vector<1x256xf32>
    %107 = arith.mulf %106, %105 : vector<1x256xf32>
    %108 = arith.addf %102, %107 : vector<1x256xf32>
    %c0_41 = arith.constant 0 : index
    %c77_42 = arith.constant 77 : index
    %109 = vector.load %arg7[%c0_41, %c77_42] : memref<1x512xf32, #tpu.memory_space<vmem>>, vector<1x256xf32>
    %110 = vector.broadcast %104 : f32 to vector<1x256xf32>
    %111 = arith.mulf %110, %109 : vector<1x256xf32>
    %112 = arith.addf %108, %111 : vector<1x256xf32>
    %c7 = arith.constant 7 : index
    %113 = memref.load %arg4[%c7] : memref<98xf32, #tpu.memory_space<smem>>
    %c56 = arith.constant 56 : index
    %114 = memref.load %arg4[%c56] : memref<98xf32, #tpu.memory_space<smem>>
    %c0_43 = arith.constant 0 : index
    %c93 = arith.constant 93 : index
    %115 = vector.load %arg6[%c0_43, %c93] : memref<1x512xf32, #tpu.memory_space<vmem>>, vector<1x256xf32>
    %116 = vector.broadcast %113 : f32 to vector<1x256xf32>
    %117 = arith.mulf %116, %115 : vector<1x256xf32>
    %118 = arith.addf %112, %117 : vector<1x256xf32>
    %c0_44 = arith.constant 0 : index
    %c93_45 = arith.constant 93 : index
    %119 = vector.load %arg7[%c0_44, %c93_45] : memref<1x512xf32, #tpu.memory_space<vmem>>, vector<1x256xf32>
    %120 = vector.broadcast %114 : f32 to vector<1x256xf32>
    %121 = arith.mulf %120, %119 : vector<1x256xf32>
    %122 = arith.addf %118, %121 : vector<1x256xf32>
    %c14 = arith.constant 14 : index
    %123 = memref.load %arg4[%c14] : memref<98xf32, #tpu.memory_space<smem>>
    %c63 = arith.constant 63 : index
    %124 = memref.load %arg4[%c63] : memref<98xf32, #tpu.memory_space<smem>>
    %c0_46 = arith.constant 0 : index
    %c109 = arith.constant 109 : index
    %125 = vector.load %arg6[%c0_46, %c109] : memref<1x512xf32, #tpu.memory_space<vmem>>, vector<1x256xf32>
    %126 = vector.broadcast %123 : f32 to vector<1x256xf32>
    %127 = arith.mulf %126, %125 : vector<1x256xf32>
    %128 = arith.addf %122, %127 : vector<1x256xf32>
    %c0_47 = arith.constant 0 : index
    %c109_48 = arith.constant 109 : index
    %129 = vector.load %arg7[%c0_47, %c109_48] : memref<1x512xf32, #tpu.memory_space<vmem>>, vector<1x256xf32>
    %130 = vector.broadcast %124 : f32 to vector<1x256xf32>
    %131 = arith.mulf %130, %129 : vector<1x256xf32>
    %132 = arith.addf %128, %131 : vector<1x256xf32>
    %c21 = arith.constant 21 : index
    %133 = memref.load %arg4[%c21] : memref<98xf32, #tpu.memory_space<smem>>
    %c70 = arith.constant 70 : index
    %134 = memref.load %arg4[%c70] : memref<98xf32, #tpu.memory_space<smem>>
    %c0_49 = arith.constant 0 : index
    %c125 = arith.constant 125 : index
    %135 = vector.load %arg6[%c0_49, %c125] : memref<1x512xf32, #tpu.memory_space<vmem>>, vector<1x256xf32>
    %136 = vector.broadcast %133 : f32 to vector<1x256xf32>
    %137 = arith.mulf %136, %135 : vector<1x256xf32>
    %138 = arith.addf %132, %137 : vector<1x256xf32>
    %c0_50 = arith.constant 0 : index
    %c125_51 = arith.constant 125 : index
    %139 = vector.load %arg7[%c0_50, %c125_51] : memref<1x512xf32, #tpu.memory_space<vmem>>, vector<1x256xf32>
    %140 = vector.broadcast %134 : f32 to vector<1x256xf32>
    %141 = arith.mulf %140, %139 : vector<1x256xf32>
    %142 = arith.addf %138, %141 : vector<1x256xf32>
    %c28 = arith.constant 28 : index
    %143 = memref.load %arg4[%c28] : memref<98xf32, #tpu.memory_space<smem>>
    %c77_52 = arith.constant 77 : index
    %144 = memref.load %arg4[%c77_52] : memref<98xf32, #tpu.memory_space<smem>>
    %c0_53 = arith.constant 0 : index
    %c141 = arith.constant 141 : index
    %145 = vector.load %arg6[%c0_53, %c141] : memref<1x512xf32, #tpu.memory_space<vmem>>, vector<1x256xf32>
    %146 = vector.broadcast %143 : f32 to vector<1x256xf32>
    %147 = arith.mulf %146, %145 : vector<1x256xf32>
    %148 = arith.addf %142, %147 : vector<1x256xf32>
    %c0_54 = arith.constant 0 : index
    %c141_55 = arith.constant 141 : index
    %149 = vector.load %arg7[%c0_54, %c141_55] : memref<1x512xf32, #tpu.memory_space<vmem>>, vector<1x256xf32>
    %150 = vector.broadcast %144 : f32 to vector<1x256xf32>
    %151 = arith.mulf %150, %149 : vector<1x256xf32>
    %152 = arith.addf %148, %151 : vector<1x256xf32>
    %c35 = arith.constant 35 : index
    %153 = memref.load %arg4[%c35] : memref<98xf32, #tpu.memory_space<smem>>
    %c84 = arith.constant 84 : index
    %154 = memref.load %arg4[%c84] : memref<98xf32, #tpu.memory_space<smem>>
    %c0_56 = arith.constant 0 : index
    %c157 = arith.constant 157 : index
    %155 = vector.load %arg6[%c0_56, %c157] : memref<1x512xf32, #tpu.memory_space<vmem>>, vector<1x256xf32>
    %156 = vector.broadcast %153 : f32 to vector<1x256xf32>
    %157 = arith.mulf %156, %155 : vector<1x256xf32>
    %158 = arith.addf %152, %157 : vector<1x256xf32>
    %c0_57 = arith.constant 0 : index
    %c157_58 = arith.constant 157 : index
    %159 = vector.load %arg7[%c0_57, %c157_58] : memref<1x512xf32, #tpu.memory_space<vmem>>, vector<1x256xf32>
    %160 = vector.broadcast %154 : f32 to vector<1x256xf32>
    %161 = arith.mulf %160, %159 : vector<1x256xf32>
    %162 = arith.addf %158, %161 : vector<1x256xf32>
    %c42 = arith.constant 42 : index
    %163 = memref.load %arg4[%c42] : memref<98xf32, #tpu.memory_space<smem>>
    %c91 = arith.constant 91 : index
    %164 = memref.load %arg4[%c91] : memref<98xf32, #tpu.memory_space<smem>>
    %c0_59 = arith.constant 0 : index
    %c173 = arith.constant 173 : index
    %165 = vector.load %arg6[%c0_59, %c173] : memref<1x512xf32, #tpu.memory_space<vmem>>, vector<1x256xf32>
    %166 = vector.broadcast %163 : f32 to vector<1x256xf32>
    %167 = arith.mulf %166, %165 : vector<1x256xf32>
    %168 = arith.addf %162, %167 : vector<1x256xf32>
    %c0_60 = arith.constant 0 : index
    %c173_61 = arith.constant 173 : index
    %169 = vector.load %arg7[%c0_60, %c173_61] : memref<1x512xf32, #tpu.memory_space<vmem>>, vector<1x256xf32>
    %170 = vector.broadcast %164 : f32 to vector<1x256xf32>
    %171 = arith.mulf %170, %169 : vector<1x256xf32>
    %172 = arith.addf %168, %171 : vector<1x256xf32>
    %cst_62 = arith.constant 0.000000e+00 : f32
    %173 = vector.broadcast %cst_62 : f32 to vector<1x256xf32>
    %174 = arith.select %23, %172, %173 : vector<1x256xi1>, vector<1x256xf32>
    %175 = arith.addf %101, %174 : vector<1x256xf32>
    %cst_63 = arith.constant 0.000000e+00 : f32
    %176 = vector.broadcast %cst_63 : f32 to vector<1x256xf32>
    %c1 = arith.constant 1 : index
    %177 = memref.load %arg4[%c1] : memref<98xf32, #tpu.memory_space<smem>>
    %c50 = arith.constant 50 : index
    %178 = memref.load %arg4[%c50] : memref<98xf32, #tpu.memory_space<smem>>
    %c0_64 = arith.constant 0 : index
    %c78 = arith.constant 78 : index
    %179 = vector.load %arg6[%c0_64, %c78] : memref<1x512xf32, #tpu.memory_space<vmem>>, vector<1x256xf32>
    %180 = vector.broadcast %177 : f32 to vector<1x256xf32>
    %181 = arith.mulf %180, %179 : vector<1x256xf32>
    %182 = arith.addf %176, %181 : vector<1x256xf32>
    %c0_65 = arith.constant 0 : index
    %c78_66 = arith.constant 78 : index
    %183 = vector.load %arg7[%c0_65, %c78_66] : memref<1x512xf32, #tpu.memory_space<vmem>>, vector<1x256xf32>
    %184 = vector.broadcast %178 : f32 to vector<1x256xf32>
    %185 = arith.mulf %184, %183 : vector<1x256xf32>
    %186 = arith.addf %182, %185 : vector<1x256xf32>
    %c8 = arith.constant 8 : index
    %187 = memref.load %arg4[%c8] : memref<98xf32, #tpu.memory_space<smem>>
    %c57 = arith.constant 57 : index
    %188 = memref.load %arg4[%c57] : memref<98xf32, #tpu.memory_space<smem>>
    %c0_67 = arith.constant 0 : index
    %c94 = arith.constant 94 : index
    %189 = vector.load %arg6[%c0_67, %c94] : memref<1x512xf32, #tpu.memory_space<vmem>>, vector<1x256xf32>
    %190 = vector.broadcast %187 : f32 to vector<1x256xf32>
    %191 = arith.mulf %190, %189 : vector<1x256xf32>
    %192 = arith.addf %186, %191 : vector<1x256xf32>
    %c0_68 = arith.constant 0 : index
    %c94_69 = arith.constant 94 : index
    %193 = vector.load %arg7[%c0_68, %c94_69] : memref<1x512xf32, #tpu.memory_space<vmem>>, vector<1x256xf32>
    %194 = vector.broadcast %188 : f32 to vector<1x256xf32>
    %195 = arith.mulf %194, %193 : vector<1x256xf32>
    %196 = arith.addf %192, %195 : vector<1x256xf32>
    %c15 = arith.constant 15 : index
    %197 = memref.load %arg4[%c15] : memref<98xf32, #tpu.memory_space<smem>>
    %c64 = arith.constant 64 : index
    %198 = memref.load %arg4[%c64] : memref<98xf32, #tpu.memory_space<smem>>
    %c0_70 = arith.constant 0 : index
    %c110 = arith.constant 110 : index
    %199 = vector.load %arg6[%c0_70, %c110] : memref<1x512xf32, #tpu.memory_space<vmem>>, vector<1x256xf32>
    %200 = vector.broadcast %197 : f32 to vector<1x256xf32>
    %201 = arith.mulf %200, %199 : vector<1x256xf32>
    %202 = arith.addf %196, %201 : vector<1x256xf32>
    %c0_71 = arith.constant 0 : index
    %c110_72 = arith.constant 110 : index
    %203 = vector.load %arg7[%c0_71, %c110_72] : memref<1x512xf32, #tpu.memory_space<vmem>>, vector<1x256xf32>
    %204 = vector.broadcast %198 : f32 to vector<1x256xf32>
    %205 = arith.mulf %204, %203 : vector<1x256xf32>
    %206 = arith.addf %202, %205 : vector<1x256xf32>
    %c22 = arith.constant 22 : index
    %207 = memref.load %arg4[%c22] : memref<98xf32, #tpu.memory_space<smem>>
    %c71 = arith.constant 71 : index
    %208 = memref.load %arg4[%c71] : memref<98xf32, #tpu.memory_space<smem>>
    %c0_73 = arith.constant 0 : index
    %c126 = arith.constant 126 : index
    %209 = vector.load %arg6[%c0_73, %c126] : memref<1x512xf32, #tpu.memory_space<vmem>>, vector<1x256xf32>
    %210 = vector.broadcast %207 : f32 to vector<1x256xf32>
    %211 = arith.mulf %210, %209 : vector<1x256xf32>
    %212 = arith.addf %206, %211 : vector<1x256xf32>
    %c0_74 = arith.constant 0 : index
    %c126_75 = arith.constant 126 : index
    %213 = vector.load %arg7[%c0_74, %c126_75] : memref<1x512xf32, #tpu.memory_space<vmem>>, vector<1x256xf32>
    %214 = vector.broadcast %208 : f32 to vector<1x256xf32>
    %215 = arith.mulf %214, %213 : vector<1x256xf32>
    %216 = arith.addf %212, %215 : vector<1x256xf32>
    %c29 = arith.constant 29 : index
    %217 = memref.load %arg4[%c29] : memref<98xf32, #tpu.memory_space<smem>>
    %c78_76 = arith.constant 78 : index
    %218 = memref.load %arg4[%c78_76] : memref<98xf32, #tpu.memory_space<smem>>
    %c0_77 = arith.constant 0 : index
    %c142 = arith.constant 142 : index
    %219 = vector.load %arg6[%c0_77, %c142] : memref<1x512xf32, #tpu.memory_space<vmem>>, vector<1x256xf32>
    %220 = vector.broadcast %217 : f32 to vector<1x256xf32>
    %221 = arith.mulf %220, %219 : vector<1x256xf32>
    %222 = arith.addf %216, %221 : vector<1x256xf32>
    %c0_78 = arith.constant 0 : index
    %c142_79 = arith.constant 142 : index
    %223 = vector.load %arg7[%c0_78, %c142_79] : memref<1x512xf32, #tpu.memory_space<vmem>>, vector<1x256xf32>
    %224 = vector.broadcast %218 : f32 to vector<1x256xf32>
    %225 = arith.mulf %224, %223 : vector<1x256xf32>
    %226 = arith.addf %222, %225 : vector<1x256xf32>
    %c36 = arith.constant 36 : index
    %227 = memref.load %arg4[%c36] : memref<98xf32, #tpu.memory_space<smem>>
    %c85 = arith.constant 85 : index
    %228 = memref.load %arg4[%c85] : memref<98xf32, #tpu.memory_space<smem>>
    %c0_80 = arith.constant 0 : index
    %c158 = arith.constant 158 : index
    %229 = vector.load %arg6[%c0_80, %c158] : memref<1x512xf32, #tpu.memory_space<vmem>>, vector<1x256xf32>
    %230 = vector.broadcast %227 : f32 to vector<1x256xf32>
    %231 = arith.mulf %230, %229 : vector<1x256xf32>
    %232 = arith.addf %226, %231 : vector<1x256xf32>
    %c0_81 = arith.constant 0 : index
    %c158_82 = arith.constant 158 : index
    %233 = vector.load %arg7[%c0_81, %c158_82] : memref<1x512xf32, #tpu.memory_space<vmem>>, vector<1x256xf32>
    %234 = vector.broadcast %228 : f32 to vector<1x256xf32>
    %235 = arith.mulf %234, %233 : vector<1x256xf32>
    %236 = arith.addf %232, %235 : vector<1x256xf32>
    %c43 = arith.constant 43 : index
    %237 = memref.load %arg4[%c43] : memref<98xf32, #tpu.memory_space<smem>>
    %c92 = arith.constant 92 : index
    %238 = memref.load %arg4[%c92] : memref<98xf32, #tpu.memory_space<smem>>
    %c0_83 = arith.constant 0 : index
    %c174 = arith.constant 174 : index
    %239 = vector.load %arg6[%c0_83, %c174] : memref<1x512xf32, #tpu.memory_space<vmem>>, vector<1x256xf32>
    %240 = vector.broadcast %237 : f32 to vector<1x256xf32>
    %241 = arith.mulf %240, %239 : vector<1x256xf32>
    %242 = arith.addf %236, %241 : vector<1x256xf32>
    %c0_84 = arith.constant 0 : index
    %c174_85 = arith.constant 174 : index
    %243 = vector.load %arg7[%c0_84, %c174_85] : memref<1x512xf32, #tpu.memory_space<vmem>>, vector<1x256xf32>
    %244 = vector.broadcast %238 : f32 to vector<1x256xf32>
    %245 = arith.mulf %244, %243 : vector<1x256xf32>
    %246 = arith.addf %242, %245 : vector<1x256xf32>
    %cst_86 = arith.constant 0.000000e+00 : f32
    %247 = vector.broadcast %cst_86 : f32 to vector<1x256xf32>
    %248 = arith.select %28, %246, %247 : vector<1x256xi1>, vector<1x256xf32>
    %249 = arith.addf %175, %248 : vector<1x256xf32>
    %cst_87 = arith.constant 0.000000e+00 : f32
    %250 = vector.broadcast %cst_87 : f32 to vector<1x256xf32>
    %c2 = arith.constant 2 : index
    %251 = memref.load %arg4[%c2] : memref<98xf32, #tpu.memory_space<smem>>
    %c51 = arith.constant 51 : index
    %252 = memref.load %arg4[%c51] : memref<98xf32, #tpu.memory_space<smem>>
    %c0_88 = arith.constant 0 : index
    %c79 = arith.constant 79 : index
    %253 = vector.load %arg6[%c0_88, %c79] : memref<1x512xf32, #tpu.memory_space<vmem>>, vector<1x256xf32>
    %254 = vector.broadcast %251 : f32 to vector<1x256xf32>
    %255 = arith.mulf %254, %253 : vector<1x256xf32>
    %256 = arith.addf %250, %255 : vector<1x256xf32>
    %c0_89 = arith.constant 0 : index
    %c79_90 = arith.constant 79 : index
    %257 = vector.load %arg7[%c0_89, %c79_90] : memref<1x512xf32, #tpu.memory_space<vmem>>, vector<1x256xf32>
    %258 = vector.broadcast %252 : f32 to vector<1x256xf32>
    %259 = arith.mulf %258, %257 : vector<1x256xf32>
    %260 = arith.addf %256, %259 : vector<1x256xf32>
    %c9 = arith.constant 9 : index
    %261 = memref.load %arg4[%c9] : memref<98xf32, #tpu.memory_space<smem>>
    %c58 = arith.constant 58 : index
    %262 = memref.load %arg4[%c58] : memref<98xf32, #tpu.memory_space<smem>>
    %c0_91 = arith.constant 0 : index
    %c95 = arith.constant 95 : index
    %263 = vector.load %arg6[%c0_91, %c95] : memref<1x512xf32, #tpu.memory_space<vmem>>, vector<1x256xf32>
    %264 = vector.broadcast %261 : f32 to vector<1x256xf32>
    %265 = arith.mulf %264, %263 : vector<1x256xf32>
    %266 = arith.addf %260, %265 : vector<1x256xf32>
    %c0_92 = arith.constant 0 : index
    %c95_93 = arith.constant 95 : index
    %267 = vector.load %arg7[%c0_92, %c95_93] : memref<1x512xf32, #tpu.memory_space<vmem>>, vector<1x256xf32>
    %268 = vector.broadcast %262 : f32 to vector<1x256xf32>
    %269 = arith.mulf %268, %267 : vector<1x256xf32>
    %270 = arith.addf %266, %269 : vector<1x256xf32>
    %c16 = arith.constant 16 : index
    %271 = memref.load %arg4[%c16] : memref<98xf32, #tpu.memory_space<smem>>
    %c65 = arith.constant 65 : index
    %272 = memref.load %arg4[%c65] : memref<98xf32, #tpu.memory_space<smem>>
    %c0_94 = arith.constant 0 : index
    %c111 = arith.constant 111 : index
    %273 = vector.load %arg6[%c0_94, %c111] : memref<1x512xf32, #tpu.memory_space<vmem>>, vector<1x256xf32>
    %274 = vector.broadcast %271 : f32 to vector<1x256xf32>
    %275 = arith.mulf %274, %273 : vector<1x256xf32>
    %276 = arith.addf %270, %275 : vector<1x256xf32>
    %c0_95 = arith.constant 0 : index
    %c111_96 = arith.constant 111 : index
    %277 = vector.load %arg7[%c0_95, %c111_96] : memref<1x512xf32, #tpu.memory_space<vmem>>, vector<1x256xf32>
    %278 = vector.broadcast %272 : f32 to vector<1x256xf32>
    %279 = arith.mulf %278, %277 : vector<1x256xf32>
    %280 = arith.addf %276, %279 : vector<1x256xf32>
    %c23 = arith.constant 23 : index
    %281 = memref.load %arg4[%c23] : memref<98xf32, #tpu.memory_space<smem>>
    %c72 = arith.constant 72 : index
    %282 = memref.load %arg4[%c72] : memref<98xf32, #tpu.memory_space<smem>>
    %c0_97 = arith.constant 0 : index
    %c127 = arith.constant 127 : index
    %283 = vector.load %arg6[%c0_97, %c127] : memref<1x512xf32, #tpu.memory_space<vmem>>, vector<1x256xf32>
    %284 = vector.broadcast %281 : f32 to vector<1x256xf32>
    %285 = arith.mulf %284, %283 : vector<1x256xf32>
    %286 = arith.addf %280, %285 : vector<1x256xf32>
    %c0_98 = arith.constant 0 : index
    %c127_99 = arith.constant 127 : index
    %287 = vector.load %arg7[%c0_98, %c127_99] : memref<1x512xf32, #tpu.memory_space<vmem>>, vector<1x256xf32>
    %288 = vector.broadcast %282 : f32 to vector<1x256xf32>
    %289 = arith.mulf %288, %287 : vector<1x256xf32>
    %290 = arith.addf %286, %289 : vector<1x256xf32>
    %c30 = arith.constant 30 : index
    %291 = memref.load %arg4[%c30] : memref<98xf32, #tpu.memory_space<smem>>
    %c79_100 = arith.constant 79 : index
    %292 = memref.load %arg4[%c79_100] : memref<98xf32, #tpu.memory_space<smem>>
    %c0_101 = arith.constant 0 : index
    %c143 = arith.constant 143 : index
    %293 = vector.load %arg6[%c0_101, %c143] : memref<1x512xf32, #tpu.memory_space<vmem>>, vector<1x256xf32>
    %294 = vector.broadcast %291 : f32 to vector<1x256xf32>
    %295 = arith.mulf %294, %293 : vector<1x256xf32>
    %296 = arith.addf %290, %295 : vector<1x256xf32>
    %c0_102 = arith.constant 0 : index
    %c143_103 = arith.constant 143 : index
    %297 = vector.load %arg7[%c0_102, %c143_103] : memref<1x512xf32, #tpu.memory_space<vmem>>, vector<1x256xf32>
    %298 = vector.broadcast %292 : f32 to vector<1x256xf32>
    %299 = arith.mulf %298, %297 : vector<1x256xf32>
    %300 = arith.addf %296, %299 : vector<1x256xf32>
    %c37 = arith.constant 37 : index
    %301 = memref.load %arg4[%c37] : memref<98xf32, #tpu.memory_space<smem>>
    %c86 = arith.constant 86 : index
    %302 = memref.load %arg4[%c86] : memref<98xf32, #tpu.memory_space<smem>>
    %c0_104 = arith.constant 0 : index
    %c159 = arith.constant 159 : index
    %303 = vector.load %arg6[%c0_104, %c159] : memref<1x512xf32, #tpu.memory_space<vmem>>, vector<1x256xf32>
    %304 = vector.broadcast %301 : f32 to vector<1x256xf32>
    %305 = arith.mulf %304, %303 : vector<1x256xf32>
    %306 = arith.addf %300, %305 : vector<1x256xf32>
    %c0_105 = arith.constant 0 : index
    %c159_106 = arith.constant 159 : index
    %307 = vector.load %arg7[%c0_105, %c159_106] : memref<1x512xf32, #tpu.memory_space<vmem>>, vector<1x256xf32>
    %308 = vector.broadcast %302 : f32 to vector<1x256xf32>
    %309 = arith.mulf %308, %307 : vector<1x256xf32>
    %310 = arith.addf %306, %309 : vector<1x256xf32>
    %c44 = arith.constant 44 : index
    %311 = memref.load %arg4[%c44] : memref<98xf32, #tpu.memory_space<smem>>
    %c93_107 = arith.constant 93 : index
    %312 = memref.load %arg4[%c93_107] : memref<98xf32, #tpu.memory_space<smem>>
    %c0_108 = arith.constant 0 : index
    %c175 = arith.constant 175 : index
    %313 = vector.load %arg6[%c0_108, %c175] : memref<1x512xf32, #tpu.memory_space<vmem>>, vector<1x256xf32>
    %314 = vector.broadcast %311 : f32 to vector<1x256xf32>
    %315 = arith.mulf %314, %313 : vector<1x256xf32>
    %316 = arith.addf %310, %315 : vector<1x256xf32>
    %c0_109 = arith.constant 0 : index
    %c175_110 = arith.constant 175 : index
    %317 = vector.load %arg7[%c0_109, %c175_110] : memref<1x512xf32, #tpu.memory_space<vmem>>, vector<1x256xf32>
    %318 = vector.broadcast %312 : f32 to vector<1x256xf32>
    %319 = arith.mulf %318, %317 : vector<1x256xf32>
    %320 = arith.addf %316, %319 : vector<1x256xf32>
    %cst_111 = arith.constant 0.000000e+00 : f32
    %321 = vector.broadcast %cst_111 : f32 to vector<1x256xf32>
    %322 = arith.select %33, %320, %321 : vector<1x256xi1>, vector<1x256xf32>
    %323 = arith.addf %249, %322 : vector<1x256xf32>
    %cst_112 = arith.constant 0.000000e+00 : f32
    %324 = vector.broadcast %cst_112 : f32 to vector<1x256xf32>
    %c3 = arith.constant 3 : index
    %325 = memref.load %arg4[%c3] : memref<98xf32, #tpu.memory_space<smem>>
    %c52 = arith.constant 52 : index
    %326 = memref.load %arg4[%c52] : memref<98xf32, #tpu.memory_space<smem>>
    %c0_113 = arith.constant 0 : index
    %c80 = arith.constant 80 : index
    %327 = vector.load %arg6[%c0_113, %c80] : memref<1x512xf32, #tpu.memory_space<vmem>>, vector<1x256xf32>
    %328 = vector.broadcast %325 : f32 to vector<1x256xf32>
    %329 = arith.mulf %328, %327 : vector<1x256xf32>
    %330 = arith.addf %324, %329 : vector<1x256xf32>
    %c0_114 = arith.constant 0 : index
    %c80_115 = arith.constant 80 : index
    %331 = vector.load %arg7[%c0_114, %c80_115] : memref<1x512xf32, #tpu.memory_space<vmem>>, vector<1x256xf32>
    %332 = vector.broadcast %326 : f32 to vector<1x256xf32>
    %333 = arith.mulf %332, %331 : vector<1x256xf32>
    %334 = arith.addf %330, %333 : vector<1x256xf32>
    %c10 = arith.constant 10 : index
    %335 = memref.load %arg4[%c10] : memref<98xf32, #tpu.memory_space<smem>>
    %c59 = arith.constant 59 : index
    %336 = memref.load %arg4[%c59] : memref<98xf32, #tpu.memory_space<smem>>
    %c0_116 = arith.constant 0 : index
    %c96 = arith.constant 96 : index
    %337 = vector.load %arg6[%c0_116, %c96] : memref<1x512xf32, #tpu.memory_space<vmem>>, vector<1x256xf32>
    %338 = vector.broadcast %335 : f32 to vector<1x256xf32>
    %339 = arith.mulf %338, %337 : vector<1x256xf32>
    %340 = arith.addf %334, %339 : vector<1x256xf32>
    %c0_117 = arith.constant 0 : index
    %c96_118 = arith.constant 96 : index
    %341 = vector.load %arg7[%c0_117, %c96_118] : memref<1x512xf32, #tpu.memory_space<vmem>>, vector<1x256xf32>
    %342 = vector.broadcast %336 : f32 to vector<1x256xf32>
    %343 = arith.mulf %342, %341 : vector<1x256xf32>
    %344 = arith.addf %340, %343 : vector<1x256xf32>
    %c17 = arith.constant 17 : index
    %345 = memref.load %arg4[%c17] : memref<98xf32, #tpu.memory_space<smem>>
    %c66 = arith.constant 66 : index
    %346 = memref.load %arg4[%c66] : memref<98xf32, #tpu.memory_space<smem>>
    %c0_119 = arith.constant 0 : index
    %c112 = arith.constant 112 : index
    %347 = vector.load %arg6[%c0_119, %c112] : memref<1x512xf32, #tpu.memory_space<vmem>>, vector<1x256xf32>
    %348 = vector.broadcast %345 : f32 to vector<1x256xf32>
    %349 = arith.mulf %348, %347 : vector<1x256xf32>
    %350 = arith.addf %344, %349 : vector<1x256xf32>
    %c0_120 = arith.constant 0 : index
    %c112_121 = arith.constant 112 : index
    %351 = vector.load %arg7[%c0_120, %c112_121] : memref<1x512xf32, #tpu.memory_space<vmem>>, vector<1x256xf32>
    %352 = vector.broadcast %346 : f32 to vector<1x256xf32>
    %353 = arith.mulf %352, %351 : vector<1x256xf32>
    %354 = arith.addf %350, %353 : vector<1x256xf32>
    %c24 = arith.constant 24 : index
    %355 = memref.load %arg4[%c24] : memref<98xf32, #tpu.memory_space<smem>>
    %c73 = arith.constant 73 : index
    %356 = memref.load %arg4[%c73] : memref<98xf32, #tpu.memory_space<smem>>
    %c0_122 = arith.constant 0 : index
    %c128_123 = arith.constant 128 : index
    %357 = vector.load %arg6[%c0_122, %c128_123] : memref<1x512xf32, #tpu.memory_space<vmem>>, vector<1x256xf32>
    %358 = vector.broadcast %355 : f32 to vector<1x256xf32>
    %359 = arith.mulf %358, %357 : vector<1x256xf32>
    %360 = arith.addf %354, %359 : vector<1x256xf32>
    %c0_124 = arith.constant 0 : index
    %c128_125 = arith.constant 128 : index
    %361 = vector.load %arg7[%c0_124, %c128_125] : memref<1x512xf32, #tpu.memory_space<vmem>>, vector<1x256xf32>
    %362 = vector.broadcast %356 : f32 to vector<1x256xf32>
    %363 = arith.mulf %362, %361 : vector<1x256xf32>
    %364 = arith.addf %360, %363 : vector<1x256xf32>
    %c31 = arith.constant 31 : index
    %365 = memref.load %arg4[%c31] : memref<98xf32, #tpu.memory_space<smem>>
    %c80_126 = arith.constant 80 : index
    %366 = memref.load %arg4[%c80_126] : memref<98xf32, #tpu.memory_space<smem>>
    %c0_127 = arith.constant 0 : index
    %c144 = arith.constant 144 : index
    %367 = vector.load %arg6[%c0_127, %c144] : memref<1x512xf32, #tpu.memory_space<vmem>>, vector<1x256xf32>
    %368 = vector.broadcast %365 : f32 to vector<1x256xf32>
    %369 = arith.mulf %368, %367 : vector<1x256xf32>
    %370 = arith.addf %364, %369 : vector<1x256xf32>
    %c0_128 = arith.constant 0 : index
    %c144_129 = arith.constant 144 : index
    %371 = vector.load %arg7[%c0_128, %c144_129] : memref<1x512xf32, #tpu.memory_space<vmem>>, vector<1x256xf32>
    %372 = vector.broadcast %366 : f32 to vector<1x256xf32>
    %373 = arith.mulf %372, %371 : vector<1x256xf32>
    %374 = arith.addf %370, %373 : vector<1x256xf32>
    %c38 = arith.constant 38 : index
    %375 = memref.load %arg4[%c38] : memref<98xf32, #tpu.memory_space<smem>>
    %c87 = arith.constant 87 : index
    %376 = memref.load %arg4[%c87] : memref<98xf32, #tpu.memory_space<smem>>
    %c0_130 = arith.constant 0 : index
    %c160 = arith.constant 160 : index
    %377 = vector.load %arg6[%c0_130, %c160] : memref<1x512xf32, #tpu.memory_space<vmem>>, vector<1x256xf32>
    %378 = vector.broadcast %375 : f32 to vector<1x256xf32>
    %379 = arith.mulf %378, %377 : vector<1x256xf32>
    %380 = arith.addf %374, %379 : vector<1x256xf32>
    %c0_131 = arith.constant 0 : index
    %c160_132 = arith.constant 160 : index
    %381 = vector.load %arg7[%c0_131, %c160_132] : memref<1x512xf32, #tpu.memory_space<vmem>>, vector<1x256xf32>
    %382 = vector.broadcast %376 : f32 to vector<1x256xf32>
    %383 = arith.mulf %382, %381 : vector<1x256xf32>
    %384 = arith.addf %380, %383 : vector<1x256xf32>
    %c45 = arith.constant 45 : index
    %385 = memref.load %arg4[%c45] : memref<98xf32, #tpu.memory_space<smem>>
    %c94_133 = arith.constant 94 : index
    %386 = memref.load %arg4[%c94_133] : memref<98xf32, #tpu.memory_space<smem>>
    %c0_134 = arith.constant 0 : index
    %c176 = arith.constant 176 : index
    %387 = vector.load %arg6[%c0_134, %c176] : memref<1x512xf32, #tpu.memory_space<vmem>>, vector<1x256xf32>
    %388 = vector.broadcast %385 : f32 to vector<1x256xf32>
    %389 = arith.mulf %388, %387 : vector<1x256xf32>
    %390 = arith.addf %384, %389 : vector<1x256xf32>
    %c0_135 = arith.constant 0 : index
    %c176_136 = arith.constant 176 : index
    %391 = vector.load %arg7[%c0_135, %c176_136] : memref<1x512xf32, #tpu.memory_space<vmem>>, vector<1x256xf32>
    %392 = vector.broadcast %386 : f32 to vector<1x256xf32>
    %393 = arith.mulf %392, %391 : vector<1x256xf32>
    %394 = arith.addf %390, %393 : vector<1x256xf32>
    %cst_137 = arith.constant 0.000000e+00 : f32
    %395 = vector.broadcast %cst_137 : f32 to vector<1x256xf32>
    %396 = arith.select %38, %394, %395 : vector<1x256xi1>, vector<1x256xf32>
    %397 = arith.addf %323, %396 : vector<1x256xf32>
    %cst_138 = arith.constant 0.000000e+00 : f32
    %398 = vector.broadcast %cst_138 : f32 to vector<1x256xf32>
    %c4 = arith.constant 4 : index
    %399 = memref.load %arg4[%c4] : memref<98xf32, #tpu.memory_space<smem>>
    %c53 = arith.constant 53 : index
    %400 = memref.load %arg4[%c53] : memref<98xf32, #tpu.memory_space<smem>>
    %c0_139 = arith.constant 0 : index
    %c81 = arith.constant 81 : index
    %401 = vector.load %arg6[%c0_139, %c81] : memref<1x512xf32, #tpu.memory_space<vmem>>, vector<1x256xf32>
    %402 = vector.broadcast %399 : f32 to vector<1x256xf32>
    %403 = arith.mulf %402, %401 : vector<1x256xf32>
    %404 = arith.addf %398, %403 : vector<1x256xf32>
    %c0_140 = arith.constant 0 : index
    %c81_141 = arith.constant 81 : index
    %405 = vector.load %arg7[%c0_140, %c81_141] : memref<1x512xf32, #tpu.memory_space<vmem>>, vector<1x256xf32>
    %406 = vector.broadcast %400 : f32 to vector<1x256xf32>
    %407 = arith.mulf %406, %405 : vector<1x256xf32>
    %408 = arith.addf %404, %407 : vector<1x256xf32>
    %c11 = arith.constant 11 : index
    %409 = memref.load %arg4[%c11] : memref<98xf32, #tpu.memory_space<smem>>
    %c60 = arith.constant 60 : index
    %410 = memref.load %arg4[%c60] : memref<98xf32, #tpu.memory_space<smem>>
    %c0_142 = arith.constant 0 : index
    %c97 = arith.constant 97 : index
    %411 = vector.load %arg6[%c0_142, %c97] : memref<1x512xf32, #tpu.memory_space<vmem>>, vector<1x256xf32>
    %412 = vector.broadcast %409 : f32 to vector<1x256xf32>
    %413 = arith.mulf %412, %411 : vector<1x256xf32>
    %414 = arith.addf %408, %413 : vector<1x256xf32>
    %c0_143 = arith.constant 0 : index
    %c97_144 = arith.constant 97 : index
    %415 = vector.load %arg7[%c0_143, %c97_144] : memref<1x512xf32, #tpu.memory_space<vmem>>, vector<1x256xf32>
    %416 = vector.broadcast %410 : f32 to vector<1x256xf32>
    %417 = arith.mulf %416, %415 : vector<1x256xf32>
    %418 = arith.addf %414, %417 : vector<1x256xf32>
    %c18 = arith.constant 18 : index
    %419 = memref.load %arg4[%c18] : memref<98xf32, #tpu.memory_space<smem>>
    %c67 = arith.constant 67 : index
    %420 = memref.load %arg4[%c67] : memref<98xf32, #tpu.memory_space<smem>>
    %c0_145 = arith.constant 0 : index
    %c113 = arith.constant 113 : index
    %421 = vector.load %arg6[%c0_145, %c113] : memref<1x512xf32, #tpu.memory_space<vmem>>, vector<1x256xf32>
    %422 = vector.broadcast %419 : f32 to vector<1x256xf32>
    %423 = arith.mulf %422, %421 : vector<1x256xf32>
    %424 = arith.addf %418, %423 : vector<1x256xf32>
    %c0_146 = arith.constant 0 : index
    %c113_147 = arith.constant 113 : index
    %425 = vector.load %arg7[%c0_146, %c113_147] : memref<1x512xf32, #tpu.memory_space<vmem>>, vector<1x256xf32>
    %426 = vector.broadcast %420 : f32 to vector<1x256xf32>
    %427 = arith.mulf %426, %425 : vector<1x256xf32>
    %428 = arith.addf %424, %427 : vector<1x256xf32>
    %c25 = arith.constant 25 : index
    %429 = memref.load %arg4[%c25] : memref<98xf32, #tpu.memory_space<smem>>
    %c74 = arith.constant 74 : index
    %430 = memref.load %arg4[%c74] : memref<98xf32, #tpu.memory_space<smem>>
    %c0_148 = arith.constant 0 : index
    %c129 = arith.constant 129 : index
    %431 = vector.load %arg6[%c0_148, %c129] : memref<1x512xf32, #tpu.memory_space<vmem>>, vector<1x256xf32>
    %432 = vector.broadcast %429 : f32 to vector<1x256xf32>
    %433 = arith.mulf %432, %431 : vector<1x256xf32>
    %434 = arith.addf %428, %433 : vector<1x256xf32>
    %c0_149 = arith.constant 0 : index
    %c129_150 = arith.constant 129 : index
    %435 = vector.load %arg7[%c0_149, %c129_150] : memref<1x512xf32, #tpu.memory_space<vmem>>, vector<1x256xf32>
    %436 = vector.broadcast %430 : f32 to vector<1x256xf32>
    %437 = arith.mulf %436, %435 : vector<1x256xf32>
    %438 = arith.addf %434, %437 : vector<1x256xf32>
    %c32 = arith.constant 32 : index
    %439 = memref.load %arg4[%c32] : memref<98xf32, #tpu.memory_space<smem>>
    %c81_151 = arith.constant 81 : index
    %440 = memref.load %arg4[%c81_151] : memref<98xf32, #tpu.memory_space<smem>>
    %c0_152 = arith.constant 0 : index
    %c145 = arith.constant 145 : index
    %441 = vector.load %arg6[%c0_152, %c145] : memref<1x512xf32, #tpu.memory_space<vmem>>, vector<1x256xf32>
    %442 = vector.broadcast %439 : f32 to vector<1x256xf32>
    %443 = arith.mulf %442, %441 : vector<1x256xf32>
    %444 = arith.addf %438, %443 : vector<1x256xf32>
    %c0_153 = arith.constant 0 : index
    %c145_154 = arith.constant 145 : index
    %445 = vector.load %arg7[%c0_153, %c145_154] : memref<1x512xf32, #tpu.memory_space<vmem>>, vector<1x256xf32>
    %446 = vector.broadcast %440 : f32 to vector<1x256xf32>
    %447 = arith.mulf %446, %445 : vector<1x256xf32>
    %448 = arith.addf %444, %447 : vector<1x256xf32>
    %c39 = arith.constant 39 : index
    %449 = memref.load %arg4[%c39] : memref<98xf32, #tpu.memory_space<smem>>
    %c88 = arith.constant 88 : index
    %450 = memref.load %arg4[%c88] : memref<98xf32, #tpu.memory_space<smem>>
    %c0_155 = arith.constant 0 : index
    %c161 = arith.constant 161 : index
    %451 = vector.load %arg6[%c0_155, %c161] : memref<1x512xf32, #tpu.memory_space<vmem>>, vector<1x256xf32>
    %452 = vector.broadcast %449 : f32 to vector<1x256xf32>
    %453 = arith.mulf %452, %451 : vector<1x256xf32>
    %454 = arith.addf %448, %453 : vector<1x256xf32>
    %c0_156 = arith.constant 0 : index
    %c161_157 = arith.constant 161 : index
    %455 = vector.load %arg7[%c0_156, %c161_157] : memref<1x512xf32, #tpu.memory_space<vmem>>, vector<1x256xf32>
    %456 = vector.broadcast %450 : f32 to vector<1x256xf32>
    %457 = arith.mulf %456, %455 : vector<1x256xf32>
    %458 = arith.addf %454, %457 : vector<1x256xf32>
    %c46 = arith.constant 46 : index
    %459 = memref.load %arg4[%c46] : memref<98xf32, #tpu.memory_space<smem>>
    %c95_158 = arith.constant 95 : index
    %460 = memref.load %arg4[%c95_158] : memref<98xf32, #tpu.memory_space<smem>>
    %c0_159 = arith.constant 0 : index
    %c177 = arith.constant 177 : index
    %461 = vector.load %arg6[%c0_159, %c177] : memref<1x512xf32, #tpu.memory_space<vmem>>, vector<1x256xf32>
    %462 = vector.broadcast %459 : f32 to vector<1x256xf32>
    %463 = arith.mulf %462, %461 : vector<1x256xf32>
    %464 = arith.addf %458, %463 : vector<1x256xf32>
    %c0_160 = arith.constant 0 : index
    %c177_161 = arith.constant 177 : index
    %465 = vector.load %arg7[%c0_160, %c177_161] : memref<1x512xf32, #tpu.memory_space<vmem>>, vector<1x256xf32>
    %466 = vector.broadcast %460 : f32 to vector<1x256xf32>
    %467 = arith.mulf %466, %465 : vector<1x256xf32>
    %468 = arith.addf %464, %467 : vector<1x256xf32>
    %cst_162 = arith.constant 0.000000e+00 : f32
    %469 = vector.broadcast %cst_162 : f32 to vector<1x256xf32>
    %470 = arith.select %43, %468, %469 : vector<1x256xi1>, vector<1x256xf32>
    %471 = arith.addf %397, %470 : vector<1x256xf32>
    %cst_163 = arith.constant 0.000000e+00 : f32
    %472 = vector.broadcast %cst_163 : f32 to vector<1x256xf32>
    %c5 = arith.constant 5 : index
    %473 = memref.load %arg4[%c5] : memref<98xf32, #tpu.memory_space<smem>>
    %c54 = arith.constant 54 : index
    %474 = memref.load %arg4[%c54] : memref<98xf32, #tpu.memory_space<smem>>
    %c0_164 = arith.constant 0 : index
    %c82 = arith.constant 82 : index
    %475 = vector.load %arg6[%c0_164, %c82] : memref<1x512xf32, #tpu.memory_space<vmem>>, vector<1x256xf32>
    %476 = vector.broadcast %473 : f32 to vector<1x256xf32>
    %477 = arith.mulf %476, %475 : vector<1x256xf32>
    %478 = arith.addf %472, %477 : vector<1x256xf32>
    %c0_165 = arith.constant 0 : index
    %c82_166 = arith.constant 82 : index
    %479 = vector.load %arg7[%c0_165, %c82_166] : memref<1x512xf32, #tpu.memory_space<vmem>>, vector<1x256xf32>
    %480 = vector.broadcast %474 : f32 to vector<1x256xf32>
    %481 = arith.mulf %480, %479 : vector<1x256xf32>
    %482 = arith.addf %478, %481 : vector<1x256xf32>
    %c12 = arith.constant 12 : index
    %483 = memref.load %arg4[%c12] : memref<98xf32, #tpu.memory_space<smem>>
    %c61 = arith.constant 61 : index
    %484 = memref.load %arg4[%c61] : memref<98xf32, #tpu.memory_space<smem>>
    %c0_167 = arith.constant 0 : index
    %c98 = arith.constant 98 : index
    %485 = vector.load %arg6[%c0_167, %c98] : memref<1x512xf32, #tpu.memory_space<vmem>>, vector<1x256xf32>
    %486 = vector.broadcast %483 : f32 to vector<1x256xf32>
    %487 = arith.mulf %486, %485 : vector<1x256xf32>
    %488 = arith.addf %482, %487 : vector<1x256xf32>
    %c0_168 = arith.constant 0 : index
    %c98_169 = arith.constant 98 : index
    %489 = vector.load %arg7[%c0_168, %c98_169] : memref<1x512xf32, #tpu.memory_space<vmem>>, vector<1x256xf32>
    %490 = vector.broadcast %484 : f32 to vector<1x256xf32>
    %491 = arith.mulf %490, %489 : vector<1x256xf32>
    %492 = arith.addf %488, %491 : vector<1x256xf32>
    %c19 = arith.constant 19 : index
    %493 = memref.load %arg4[%c19] : memref<98xf32, #tpu.memory_space<smem>>
    %c68 = arith.constant 68 : index
    %494 = memref.load %arg4[%c68] : memref<98xf32, #tpu.memory_space<smem>>
    %c0_170 = arith.constant 0 : index
    %c114 = arith.constant 114 : index
    %495 = vector.load %arg6[%c0_170, %c114] : memref<1x512xf32, #tpu.memory_space<vmem>>, vector<1x256xf32>
    %496 = vector.broadcast %493 : f32 to vector<1x256xf32>
    %497 = arith.mulf %496, %495 : vector<1x256xf32>
    %498 = arith.addf %492, %497 : vector<1x256xf32>
    %c0_171 = arith.constant 0 : index
    %c114_172 = arith.constant 114 : index
    %499 = vector.load %arg7[%c0_171, %c114_172] : memref<1x512xf32, #tpu.memory_space<vmem>>, vector<1x256xf32>
    %500 = vector.broadcast %494 : f32 to vector<1x256xf32>
    %501 = arith.mulf %500, %499 : vector<1x256xf32>
    %502 = arith.addf %498, %501 : vector<1x256xf32>
    %c26 = arith.constant 26 : index
    %503 = memref.load %arg4[%c26] : memref<98xf32, #tpu.memory_space<smem>>
    %c75 = arith.constant 75 : index
    %504 = memref.load %arg4[%c75] : memref<98xf32, #tpu.memory_space<smem>>
    %c0_173 = arith.constant 0 : index
    %c130 = arith.constant 130 : index
    %505 = vector.load %arg6[%c0_173, %c130] : memref<1x512xf32, #tpu.memory_space<vmem>>, vector<1x256xf32>
    %506 = vector.broadcast %503 : f32 to vector<1x256xf32>
    %507 = arith.mulf %506, %505 : vector<1x256xf32>
    %508 = arith.addf %502, %507 : vector<1x256xf32>
    %c0_174 = arith.constant 0 : index
    %c130_175 = arith.constant 130 : index
    %509 = vector.load %arg7[%c0_174, %c130_175] : memref<1x512xf32, #tpu.memory_space<vmem>>, vector<1x256xf32>
    %510 = vector.broadcast %504 : f32 to vector<1x256xf32>
    %511 = arith.mulf %510, %509 : vector<1x256xf32>
    %512 = arith.addf %508, %511 : vector<1x256xf32>
    %c33 = arith.constant 33 : index
    %513 = memref.load %arg4[%c33] : memref<98xf32, #tpu.memory_space<smem>>
    %c82_176 = arith.constant 82 : index
    %514 = memref.load %arg4[%c82_176] : memref<98xf32, #tpu.memory_space<smem>>
    %c0_177 = arith.constant 0 : index
    %c146 = arith.constant 146 : index
    %515 = vector.load %arg6[%c0_177, %c146] : memref<1x512xf32, #tpu.memory_space<vmem>>, vector<1x256xf32>
    %516 = vector.broadcast %513 : f32 to vector<1x256xf32>
    %517 = arith.mulf %516, %515 : vector<1x256xf32>
    %518 = arith.addf %512, %517 : vector<1x256xf32>
    %c0_178 = arith.constant 0 : index
    %c146_179 = arith.constant 146 : index
    %519 = vector.load %arg7[%c0_178, %c146_179] : memref<1x512xf32, #tpu.memory_space<vmem>>, vector<1x256xf32>
    %520 = vector.broadcast %514 : f32 to vector<1x256xf32>
    %521 = arith.mulf %520, %519 : vector<1x256xf32>
    %522 = arith.addf %518, %521 : vector<1x256xf32>
    %c40 = arith.constant 40 : index
    %523 = memref.load %arg4[%c40] : memref<98xf32, #tpu.memory_space<smem>>
    %c89 = arith.constant 89 : index
    %524 = memref.load %arg4[%c89] : memref<98xf32, #tpu.memory_space<smem>>
    %c0_180 = arith.constant 0 : index
    %c162 = arith.constant 162 : index
    %525 = vector.load %arg6[%c0_180, %c162] : memref<1x512xf32, #tpu.memory_space<vmem>>, vector<1x256xf32>
    %526 = vector.broadcast %523 : f32 to vector<1x256xf32>
    %527 = arith.mulf %526, %525 : vector<1x256xf32>
    %528 = arith.addf %522, %527 : vector<1x256xf32>
    %c0_181 = arith.constant 0 : index
    %c162_182 = arith.constant 162 : index
    %529 = vector.load %arg7[%c0_181, %c162_182] : memref<1x512xf32, #tpu.memory_space<vmem>>, vector<1x256xf32>
    %530 = vector.broadcast %524 : f32 to vector<1x256xf32>
    %531 = arith.mulf %530, %529 : vector<1x256xf32>
    %532 = arith.addf %528, %531 : vector<1x256xf32>
    %c47 = arith.constant 47 : index
    %533 = memref.load %arg4[%c47] : memref<98xf32, #tpu.memory_space<smem>>
    %c96_183 = arith.constant 96 : index
    %534 = memref.load %arg4[%c96_183] : memref<98xf32, #tpu.memory_space<smem>>
    %c0_184 = arith.constant 0 : index
    %c178 = arith.constant 178 : index
    %535 = vector.load %arg6[%c0_184, %c178] : memref<1x512xf32, #tpu.memory_space<vmem>>, vector<1x256xf32>
    %536 = vector.broadcast %533 : f32 to vector<1x256xf32>
    %537 = arith.mulf %536, %535 : vector<1x256xf32>
    %538 = arith.addf %532, %537 : vector<1x256xf32>
    %c0_185 = arith.constant 0 : index
    %c178_186 = arith.constant 178 : index
    %539 = vector.load %arg7[%c0_185, %c178_186] : memref<1x512xf32, #tpu.memory_space<vmem>>, vector<1x256xf32>
    %540 = vector.broadcast %534 : f32 to vector<1x256xf32>
    %541 = arith.mulf %540, %539 : vector<1x256xf32>
    %542 = arith.addf %538, %541 : vector<1x256xf32>
    %cst_187 = arith.constant 0.000000e+00 : f32
    %543 = vector.broadcast %cst_187 : f32 to vector<1x256xf32>
    %544 = arith.select %48, %542, %543 : vector<1x256xi1>, vector<1x256xf32>
    %545 = arith.addf %471, %544 : vector<1x256xf32>
    %cst_188 = arith.constant 0.000000e+00 : f32
    %546 = vector.broadcast %cst_188 : f32 to vector<1x256xf32>
    %c6 = arith.constant 6 : index
    %547 = memref.load %arg4[%c6] : memref<98xf32, #tpu.memory_space<smem>>
    %c55 = arith.constant 55 : index
    %548 = memref.load %arg4[%c55] : memref<98xf32, #tpu.memory_space<smem>>
    %c0_189 = arith.constant 0 : index
    %c83 = arith.constant 83 : index
    %549 = vector.load %arg6[%c0_189, %c83] : memref<1x512xf32, #tpu.memory_space<vmem>>, vector<1x256xf32>
    %550 = vector.broadcast %547 : f32 to vector<1x256xf32>
    %551 = arith.mulf %550, %549 : vector<1x256xf32>
    %552 = arith.addf %546, %551 : vector<1x256xf32>
    %c0_190 = arith.constant 0 : index
    %c83_191 = arith.constant 83 : index
    %553 = vector.load %arg7[%c0_190, %c83_191] : memref<1x512xf32, #tpu.memory_space<vmem>>, vector<1x256xf32>
    %554 = vector.broadcast %548 : f32 to vector<1x256xf32>
    %555 = arith.mulf %554, %553 : vector<1x256xf32>
    %556 = arith.addf %552, %555 : vector<1x256xf32>
    %c13 = arith.constant 13 : index
    %557 = memref.load %arg4[%c13] : memref<98xf32, #tpu.memory_space<smem>>
    %c62 = arith.constant 62 : index
    %558 = memref.load %arg4[%c62] : memref<98xf32, #tpu.memory_space<smem>>
    %c0_192 = arith.constant 0 : index
    %c99 = arith.constant 99 : index
    %559 = vector.load %arg6[%c0_192, %c99] : memref<1x512xf32, #tpu.memory_space<vmem>>, vector<1x256xf32>
    %560 = vector.broadcast %557 : f32 to vector<1x256xf32>
    %561 = arith.mulf %560, %559 : vector<1x256xf32>
    %562 = arith.addf %556, %561 : vector<1x256xf32>
    %c0_193 = arith.constant 0 : index
    %c99_194 = arith.constant 99 : index
    %563 = vector.load %arg7[%c0_193, %c99_194] : memref<1x512xf32, #tpu.memory_space<vmem>>, vector<1x256xf32>
    %564 = vector.broadcast %558 : f32 to vector<1x256xf32>
    %565 = arith.mulf %564, %563 : vector<1x256xf32>
    %566 = arith.addf %562, %565 : vector<1x256xf32>
    %c20 = arith.constant 20 : index
    %567 = memref.load %arg4[%c20] : memref<98xf32, #tpu.memory_space<smem>>
    %c69 = arith.constant 69 : index
    %568 = memref.load %arg4[%c69] : memref<98xf32, #tpu.memory_space<smem>>
    %c0_195 = arith.constant 0 : index
    %c115 = arith.constant 115 : index
    %569 = vector.load %arg6[%c0_195, %c115] : memref<1x512xf32, #tpu.memory_space<vmem>>, vector<1x256xf32>
    %570 = vector.broadcast %567 : f32 to vector<1x256xf32>
    %571 = arith.mulf %570, %569 : vector<1x256xf32>
    %572 = arith.addf %566, %571 : vector<1x256xf32>
    %c0_196 = arith.constant 0 : index
    %c115_197 = arith.constant 115 : index
    %573 = vector.load %arg7[%c0_196, %c115_197] : memref<1x512xf32, #tpu.memory_space<vmem>>, vector<1x256xf32>
    %574 = vector.broadcast %568 : f32 to vector<1x256xf32>
    %575 = arith.mulf %574, %573 : vector<1x256xf32>
    %576 = arith.addf %572, %575 : vector<1x256xf32>
    %c27 = arith.constant 27 : index
    %577 = memref.load %arg4[%c27] : memref<98xf32, #tpu.memory_space<smem>>
    %c76 = arith.constant 76 : index
    %578 = memref.load %arg4[%c76] : memref<98xf32, #tpu.memory_space<smem>>
    %c0_198 = arith.constant 0 : index
    %c131 = arith.constant 131 : index
    %579 = vector.load %arg6[%c0_198, %c131] : memref<1x512xf32, #tpu.memory_space<vmem>>, vector<1x256xf32>
    %580 = vector.broadcast %577 : f32 to vector<1x256xf32>
    %581 = arith.mulf %580, %579 : vector<1x256xf32>
    %582 = arith.addf %576, %581 : vector<1x256xf32>
    %c0_199 = arith.constant 0 : index
    %c131_200 = arith.constant 131 : index
    %583 = vector.load %arg7[%c0_199, %c131_200] : memref<1x512xf32, #tpu.memory_space<vmem>>, vector<1x256xf32>
    %584 = vector.broadcast %578 : f32 to vector<1x256xf32>
    %585 = arith.mulf %584, %583 : vector<1x256xf32>
    %586 = arith.addf %582, %585 : vector<1x256xf32>
    %c34 = arith.constant 34 : index
    %587 = memref.load %arg4[%c34] : memref<98xf32, #tpu.memory_space<smem>>
    %c83_201 = arith.constant 83 : index
    %588 = memref.load %arg4[%c83_201] : memref<98xf32, #tpu.memory_space<smem>>
    %c0_202 = arith.constant 0 : index
    %c147 = arith.constant 147 : index
    %589 = vector.load %arg6[%c0_202, %c147] : memref<1x512xf32, #tpu.memory_space<vmem>>, vector<1x256xf32>
    %590 = vector.broadcast %587 : f32 to vector<1x256xf32>
    %591 = arith.mulf %590, %589 : vector<1x256xf32>
    %592 = arith.addf %586, %591 : vector<1x256xf32>
    %c0_203 = arith.constant 0 : index
    %c147_204 = arith.constant 147 : index
    %593 = vector.load %arg7[%c0_203, %c147_204] : memref<1x512xf32, #tpu.memory_space<vmem>>, vector<1x256xf32>
    %594 = vector.broadcast %588 : f32 to vector<1x256xf32>
    %595 = arith.mulf %594, %593 : vector<1x256xf32>
    %596 = arith.addf %592, %595 : vector<1x256xf32>
    %c41 = arith.constant 41 : index
    %597 = memref.load %arg4[%c41] : memref<98xf32, #tpu.memory_space<smem>>
    %c90 = arith.constant 90 : index
    %598 = memref.load %arg4[%c90] : memref<98xf32, #tpu.memory_space<smem>>
    %c0_205 = arith.constant 0 : index
    %c163 = arith.constant 163 : index
    %599 = vector.load %arg6[%c0_205, %c163] : memref<1x512xf32, #tpu.memory_space<vmem>>, vector<1x256xf32>
    %600 = vector.broadcast %597 : f32 to vector<1x256xf32>
    %601 = arith.mulf %600, %599 : vector<1x256xf32>
    %602 = arith.addf %596, %601 : vector<1x256xf32>
    %c0_206 = arith.constant 0 : index
    %c163_207 = arith.constant 163 : index
    %603 = vector.load %arg7[%c0_206, %c163_207] : memref<1x512xf32, #tpu.memory_space<vmem>>, vector<1x256xf32>
    %604 = vector.broadcast %598 : f32 to vector<1x256xf32>
    %605 = arith.mulf %604, %603 : vector<1x256xf32>
    %606 = arith.addf %602, %605 : vector<1x256xf32>
    %c48 = arith.constant 48 : index
    %607 = memref.load %arg4[%c48] : memref<98xf32, #tpu.memory_space<smem>>
    %c97_208 = arith.constant 97 : index
    %608 = memref.load %arg4[%c97_208] : memref<98xf32, #tpu.memory_space<smem>>
    %c0_209 = arith.constant 0 : index
    %c179 = arith.constant 179 : index
    %609 = vector.load %arg6[%c0_209, %c179] : memref<1x512xf32, #tpu.memory_space<vmem>>, vector<1x256xf32>
    %610 = vector.broadcast %607 : f32 to vector<1x256xf32>
    %611 = arith.mulf %610, %609 : vector<1x256xf32>
    %612 = arith.addf %606, %611 : vector<1x256xf32>
    %c0_210 = arith.constant 0 : index
    %c179_211 = arith.constant 179 : index
    %613 = vector.load %arg7[%c0_210, %c179_211] : memref<1x512xf32, #tpu.memory_space<vmem>>, vector<1x256xf32>
    %614 = vector.broadcast %608 : f32 to vector<1x256xf32>
    %615 = arith.mulf %614, %613 : vector<1x256xf32>
    %616 = arith.addf %612, %615 : vector<1x256xf32>
    %cst_212 = arith.constant 0.000000e+00 : f32
    %617 = vector.broadcast %cst_212 : f32 to vector<1x256xf32>
    %618 = arith.select %53, %616, %617 : vector<1x256xi1>, vector<1x256xf32>
    %619 = arith.addf %545, %618 : vector<1x256xf32>
    %620 = math.absf %619 : vector<1x256xf32>
    %cst_213 = arith.constant 0.000000e+00 : f32
    %621 = vector.broadcast %cst_213 : f32 to vector<1x256xf32>
    %622 = arith.subf %621, %620 : vector<1x256xf32>
    %623 = math.exp %622 : vector<1x256xf32>
    %cst_214 = arith.constant 1.000000e+00 : f32
    %624 = vector.broadcast %cst_214 : f32 to vector<1x256xf32>
    %625 = arith.addf %624, %623 : vector<1x256xf32>
    %cst_215 = arith.constant 1.000000e+00 : f32
    %626 = vector.broadcast %cst_215 : f32 to vector<1x256xf32>
    %627 = arith.divf %626, %625 : vector<1x256xf32>
    %cst_216 = arith.constant 0.000000e+00 : f32
    %628 = vector.broadcast %cst_216 : f32 to vector<1x256xf32>
    %629 = arith.cmpf oge, %619, %628 : vector<1x256xf32>
    %630 = arith.mulf %623, %627 : vector<1x256xf32>
    %631 = arith.select %629, %627, %630 : vector<1x256xi1>, vector<1x256xf32>
    %cst_217 = arith.constant 2.000000e+00 : f32
    %632 = vector.broadcast %cst_217 : f32 to vector<32x1xf32>
    %633 = arith.addf %92, %632 : vector<32x1xf32>
    %634 = vector.broadcast %633 : vector<32x1xf32> to vector<32x256xf32>
    %635 = vector.broadcast %631 : vector<1x256xf32> to vector<32x256xf32>
    %636 = arith.addf %634, %635 : vector<32x256xf32>
    %637 = arith.mulf %63, %636 : vector<32x256xf32>
    %c0_218 = arith.constant 0 : index
    %c0_219 = arith.constant 0 : index
    %c0_220 = arith.constant 0 : index
    %638 = vector.load %arg5[%c0_218, %c0_219, %c0_220] : memref<1x32x256xf32, #tpu.memory_space<vmem>>, vector<1x32x256xf32>
    %639 = vector.shape_cast %638 : vector<1x32x256xf32> to vector<32x256xf32>
    %640 = vector.shape_cast %637 : vector<32x256xf32> to vector<1x32x256xf32>
    tpu.vector_store %arg5[%c0_218, %c0_219, %c0_220], %640 {strides = array<i32>} : memref<1x32x256xf32, #tpu.memory_space<vmem>>, vector<1x32x256xf32>,
    return
  }
  func.func @transform_0(%arg0: i32) -> (i32, i32, i32) {
    %c0_i32 = arith.constant 0 : i32
    %c0_i32_0 = arith.constant 0 : i32
    %c0_i32_1 = arith.constant 0 : i32
    return %arg0, %c0_i32, %c0_i32_0 : i32, i32, i32
  }
  func.func @transform_1(%arg0: i32) -> (i32, i32) {
    %c0_i32 = arith.constant 0 : i32
    %c0_i32_0 = arith.constant 0 : i32
    %c0_i32_1 = arith.constant 0 : i32
    return %c0_i32, %c0_i32_0 : i32, i32
  }
  func.func @transform_2(%arg0: i32) -> (i32, i32) {
    %c0_i32 = arith.constant 0 : i32
    %c0_i32_0 = arith.constant 0 : i32
    %c0_i32_1 = arith.constant 0 : i32
    return %c0_i32, %c0_i32_0 : i32, i32
  }
  func.func @transform_3(%arg0: i32) -> i32 {
    %c0_i32 = arith.constant 0 : i32
    %c0_i32_0 = arith.constant 0 : i32
    return %c0_i32 : i32
  }
  func.func @transform_4(%arg0: i32) -> (i32, i32, i32) {
    %c0_i32 = arith.constant 0 : i32
    %c0_i32_0 = arith.constant 0 : i32
    %c0_i32_1 = arith.constant 0 : i32
    return %arg0, %c0_i32, %c0_i32_0 : i32, i32, i32
  }
}

</mosaic_0001>

<bundles_post_ra>
// kernel: tpu_custom_call.1
= control target key start
LH: loop header
LB: loop body
LE: loop exit
PB: predicated region body
PF: predicated region fallthrough
CT: control target
= control target key end

     0   :  { %s3172_s0 = inlined_call_operand.hbm [shape: f32[2,32,256], index: 0, kind: input, shape index: {}]   ;;  %s3173_s1 = inlined_call_operand.vmem [shape: f32[2,32], index: 1, kind: input, shape index: {}]   ;;  %s3174_s2 = inlined_call_operand.vmem [shape: f32[32,2], index: 2, kind: input, shape index: {}]   ;;  %s3175_s3 = inlined_call_operand.vmem [shape: f32[98], index: 3, kind: input, shape index: {}]   ;;  %s3176_s4 = inlined_call_operand.hbm [shape: f32[2,32,256], index: 4, kind: output, shape index: {}]  }
   0x1   :  { %3189 = sst [smem:[#allocation14_spill]] %s3172_s0 }
   0x2   :  { %3190 = sst [smem:[#allocation15_spill]] %s3173_s1 }
   0x3   :  { %3191 = sst [smem:[#allocation16_spill]] %s3175_s3 }
   0x4   :  { %9 = vsyncpa [#allocation5], 0 }
   0x5   :  { %11 = vsyncpa [#allocation5 + $0x1], 0 }
   0x6   :  { %12 = vsyncpa [#allocation7], 0 }
   0x7   :  { %13 = vsyncpa [#allocation6], 0 }
   0x8   :  { %15 = vsyncpa [#allocation6 + $0x1], 0  ;;  %s2338_s15 = smov 0   ;;  %s2340_s16 = smov 0  }
   0x9   :  { %s2342_s17 = smov 0   ;;  %s2344_s18 = smov 0  }
   0xa LB: > { %s2359_s19 = sadd.s32 4294967295, %s2289_s18   ;;  %s1919_s20 = sadd.s32 4294967294, %s2289_s18   ;;  %s2289_s18 = sphi %s2344_s18, %s3219_s18   ;;  %s2285_s17 = sphi %s2342_s17, %s3218_s17   ;;  %s2281_s16 = sphi %s2340_s16, %s3217_s16   ;;  %s2277_s15 = sphi %s2338_s15, %s3216_s15  }
   0xb   : > { %s2363_s21 = sadd.s32 1, %s2289_s18   ;;  %s28_s22 = sadd.s32 1, %s2285_s17 }
   0xc   : > { %s25_s23 = ssub.s32 %s2289_s18, %s2363_s21  ;;  %p35_p0 = scmp.ne.s32.totalorder %s2285_s17, %s2281_s16 }
   0xd   : > { %p26_p1 = scmp.eq.s32.totalorder %s25_s23, 0  ;;  %p36_p2 = scmp.eq.s32.totalorder %s2289_s18, 0 }
   0xe   : > { %p41_p3 = scmp.ne.s32.totalorder %s2281_s16, %s2277_s15  ;;  %p3178_p4 = scmp.eq.s32.totalorder %s2359_s19, 0 }
   0xf   : > { %s2375_s24 = scalar_select %p26_p1, %s2285_s17, %s28_s22  }
  0x10   : > { %p2377_p5 = por %p36_p2, %p35_p0  ;;  %p2383_p6 = por %p3178_p4, %p41_p3 }
  0x11   : > { %3192 = sst [smem:[#allocation13_spill]] %s2375_s24  ;;  %p128_p7 = scmp.eq.s32.totalorder %s2359_s19, 1 }
  0x12   : > { %s3194_s26 = scalar_select %p2383_p6, 1, 0 }
  0x13   : > { %p134_p8 = scmp.eq.s32.totalorder %s1919_s20, 1  ;;  %p1920_p9 = scmp.ge.s32.totalorder %s2289_s18, 1 }
  0x14   : > { %p141_p10 = scmp.lt.s32.totalorder %s2289_s18, 3  ;;  %p2390_p11 = por %p128_p7, %p35_p0 }
  0x15   : > { %p2394_p12 = por %p134_p8, %p41_p3  ;;  %s3198_s3 = sld [smem:[#allocation16_spill]] }
  0x16   : > { %s3195_s27 = scalar_select %p2390_p11, 1, 0 }
  0x17   : > { %s3196_s28 = scalar_select %p2394_p12, 1, 0 }
  0x18   : > { %p2398_p13 = pnand %p1920_p9, %p141_p10  ;;  %p2090_p2 = scmp.lt.s32.totalorder %s2289_s18, 2 }
  0x19   : > { %s171_s8 = sand.u32 1, %s2285_s17  }
  0x1a   : > { %s3197_s29 = scalar_select %p2398_p13, 1, 0 }
  0x1b   : > { %s160_s6 = sshll.u32 %s3198_s3, 4  ;;  %p2077_p1 = pneg %p2398_p13  ;;  %s161_s6 = int_to_ptr.vmem [resolvable:$true] %s160_s6 }
  0x1c   : > { %p2418_p3 = pnand %p2090_p2, %p2377_p5  ;;  %s1923_s10 = sshll.u32 %s171_s8, 6 }
  0x1d   : > { %p2411_p7 = pnand %p2077_p1, %p3178_p4  ;;  %s2178_s11 = scalar_lea.vmem %s161_s6, 16 }
  0x1e   : > { %p2179_p8 = scmp.ne.s32.totalorder %s161_s6, %s2178_s11  ;;  %p2186_p12 = scmp.lt.s32.totalorder %s161_s6, %s161_s6 }
  0x1f   : > { %p2180_p9 = pneg %p2411_p7  ;;  %p2187_p11 = scmp.lt.s32.totalorder %s2178_s11, %s2178_s11 }
  0x21   : > { %p2181_p10 = pnand %p2180_p9, %p2179_p8  ;;  %p2188_p1 = por %p2187_p11, %p2186_p12 }
  0x23   : > { %p2182_p0 = pneg %p2181_p10 }
  0x25   : > { %p2189_p4 = pnand %p2188_p1, %p2182_p0 }
  0x27   : > { %2192 = shalt.err (!%p2189_p4)
}
  0x28   : > { %s2291_s12 = smov [#allocation8]   ;;  %s2038_s13 = sshll.u32 %s2289_s18, 10 }
  0x29   : > { %2080 = dma.vmem_to_smem (!%p2411_p7), %s161_s6, 16, %s2291_s12, [#allocation7]  }
  0x2a   : > { %s175_s14 = scalar_lea.vmem [#allocation4], %s1923_s10  ;;  %s3201_s0 = sld [smem:[#allocation14_spill]] }
  0x2b   : > { %s182_s20 = sshll.u32 %s175_s14, 4  ;;  %s2434_s30 = scalar_lea.sflag [#allocation5], %s171_s8  ;;  %s2432_s20 = int_to_ptr.vmem [resolvable:$true] %s182_s20 }
  0x2c   : > { %p2195_p5 = pneg %p2418_p3 }
  0x30   : > { %s2430_s25 = scalar_lea.hbm %s3201_s0, %s2038_s13  ;;  %s2198_s10 = scalar_lea.hbm %s3201_s0, 2048 }
  0x31   : > { %s2193_s5 = scalar_lea.hbm %s2430_s25, 1024  ;;  %p2199_p0 = scmp.lt.s32.totalorder %s2430_s25, %s3201_s0 }
  0x32   : > { %p2194_p4 = scmp.ne.s32.totalorder %s2430_s25, %s2193_s5  ;;  %p2200_p2 = scmp.lt.s32.totalorder %s2198_s10, %s2193_s5 }
  0x34   : > { %p2196_p11 = pnand %p2195_p5, %p2194_p4  ;;  %p2201_p7 = por %p2200_p2, %p2199_p0 }
  0x36   : > { %p2197_p12 = pneg %p2196_p11 }
  0x38   : > { %p2202_p8 = pnand %p2201_p7, %p2197_p12 }
  0x3a   : > { %2205 = shalt.err (!%p2202_p8)
}
  0x3b   : > { %s2206_s8 = scalar_lea.vmem %s2432_s20, 1024  ;;  %s2292_s13 = smov [#allocation4]  }
  0x3c   : > { %p2207_p9 = scmp.ne.s32.totalorder %s2432_s20, %s2206_s8  ;;  %s2211_s14 = sshll.u32 %s2292_s13, 4  ;;  %s2212_s14 = int_to_ptr.vmem [resolvable:$false] %s2211_s14 }
  0x3d   : > { %s2213_s22 = scalar_lea.vmem %s2212_s14, 2048  ;;  %p2214_p4 = scmp.lt.s32.totalorder %s2432_s20, %s2212_s14 }
  0x3e   : > { %p2209_p10 = pnand %p2207_p9, %p2195_p5  ;;  %p2215_p11 = scmp.lt.s32.totalorder %s2213_s22, %s2206_s8 }
  0x40   : > { %p2210_p1 = pneg %p2209_p10  ;;  %p2216_p6 = por %p2215_p11, %p2214_p4 }
  0x42   : > { %p2217_p13 = pnand %p2216_p6, %p2210_p1 }
  0x44   : > { %2220 = shalt.err (!%p2217_p13)
}
  0x45   : > { %s2293_s23 = smov 256   ;;  %s2294_s5 = smov 16  }
  0x46   : > { %2084 = dma.hbm_to_vmem [thread:$0]  (!%p2418_p3), %s2430_s25, 1024, %s2432_s20, %s2434_s30, %s2293_s23, %s2293_s23, %s2294_s5  }
  0x47   : > { %p3202_p5 = scmp.ne.s32.totalorder %s3197_s29, 0 }
  0x48   : > { %s2458_s6 = sand.u32 (!%p3202_p5), 1, %s2281_s16   ;;  %p3203_p6 = scmp.ne.s32.totalorder (!%p3202_p5), %s3194_s26, 0 }
  0x49   : > { %194 = sbr.rel (%p3202_p5) target bundleno = 846 (0x34e), region = 36  ;;  %s3181_s7 = sshll.u32 (!%p3202_p5), %s2458_s6, 6 }
  0x4a   : > { %s197_s10 = scalar_lea.sflag (!%p3202_p5), [#allocation5], %s2458_s6  ;;  %s2464_s11 = scalar_lea.vmem (!%p3202_p5), [#allocation4], %s3181_s7 }
  0x4e   : > { %2264 = dma.done.wait (%p3203_p6), %s197_s10, 1024  }
  0x4f   : > { %2266 = vsyncadd (%p3203_p6), %s197_s10, 4294966272  ;;  %p3204_p13 = scmp.eq.s32.totalorder %s2359_s19, 0 }
  0x51   : > { %2268 = dma.done.wait (%p3204_p13), [#allocation7], 16   ;;  %p3205_p3 = pmov %p3204_p13 }
  0x53   : > { %2270 = vsyncadd (%p3205_p3), [#allocation7], 4294967280 }
  0x54   : > { %209 = sfence }
  0x55   : > { %v319_v0 = vld [vmem:[%s2464_s11 + $0x30] sm:$0xff]  ;;  %v320_v1 = vld [vmem:[%s2464_s11 + $0x38] sm:$0xff]  ;;  %v317_v2 = vld [vmem:[%s2464_s11 + $0x20] sm:$0xff]  ;;  %v2295_v8 = vmov 0.0   ;;  %v235_v12 = vlaneseq  ;;  %v2296_v31 = vmov 1966171168  }
  0x56   : > { %v347_v3 = vmax.f32 %v319_v0, %v320_v1  ;;  %v330_v4 = vadd.f32 %v320_v1, %v319_v0  ;;  %v318_v5 = vld [vmem:[%s2464_s11 + $0x28] sm:$0xff]  ;;  %v315_v6 = vld [vmem:[%s2464_s11 + $0x10] sm:$0xff]  ;;  %v316_v7 = vld [vmem:[%s2464_s11 + $0x18] sm:$0xff]  ;;  %2050 = vmatprep.subr.mxu0 %v2295_v8  ;;  %v626_v32 = vunpack.c.l.s4 %v2296_v31  ;;  %s1938_s26 = sld [smem:[#allocation8 + $0x38]]  ;;  %vm2297_vm2 = vmmov 0   ;;  %s2298_s8 = smov 112  }
  0x57   : > { %v605_v9 = vmax.f32 %v315_v6, %v319_v0  ;;  %v614_v10 = vmax.f32 %v316_v7, %v320_v1  ;;  %v313_v11 = vld [vmem:[%s2464_s11] sm:$0xff]  ;;  %v327_v13 = vadd.f32 %v318_v5, %v317_v2  ;;  %v324_v14 = vadd.f32 %v316_v7, %v315_v6  ;;  %v314_v15 = vld [vmem:[%s2464_s11 + $0x8] sm:$0xff]  ;;  %s1939_s29 = sld [smem:[#allocation8 + $0xe]]  ;;  %2058 = vmatprep.mubr.msk.f32.mxu0 %vm2297_vm2, %v2295_v8  ;;  %s2299_s22 = smov 96  }
  0x58   : > { %348 = vmax.xlane.f32.xlu1 %v347_v3  ;;  %331 = vadd.xlane.f32.xlu0 %v330_v4  ;;  %v583_v16 = vadd.f32 %v315_v6, %v313_v11  ;;  %v592_v17 = vadd.f32 %v316_v7, %v314_v15  ;;  %v604_v18 = vmax.f32 %v313_v11, %v317_v2  ;;  %vm307_vm0 = vcmp.lt.s32.totalorder %v235_v12, 128  ;;  %s1937_s9 = sld [smem:[#allocation8 + $0x7]]  ;;  %s3185_s7 = smov 32  }
  0x59   : > { %v613_v19 = vmax.f32 %v314_v15, %v318_v5  ;;  %309 = vst.msk [vmem:[#allocation2] sm:$0x1] %vm307_vm0, %v2295_v8  ;;  %310 = vst.msk [vmem:[#allocation2 + $0x3] sm:$0x1] %vm307_vm0, %v2295_v8  ;;  %v344_v24 = vmax.f32 %v317_v2, %v318_v5  ;;  %v321_v25 = vadd.f32 %v314_v15, %v313_v11  ;;  %v627_v43 = vunpack.c.0.s8 %v626_v32  ;;  %s1951_s20 = sld [smem:[#allocation8 + $0x8]]  ;;  %s3208_s3 = smov 80  }
  0x5a   : > { %v584_v20 = vadd.f32 %v583_v16, %v317_v2  ;;  %311 = vst.msk [vmem:[#allocation3] sm:$0x1] %vm307_vm0, %v2295_v8  ;;  %312 = vst.msk [vmem:[#allocation3 + $0x3] sm:$0x1] %vm307_vm0, %v2295_v8  ;;  %v593_v21 = vadd.f32 %v592_v17, %v318_v5  ;;  %v606_v22 = vmax.f32 %v604_v18, %v605_v9  ;;  %v2489_v47 = vshrl.u32 %v235_v12, 7  ;;  %s1952_s25 = sld [smem:[#allocation8 + $0x39]] }
  0x5b   : > { %v615_v23 = vmax.f32 %v613_v19, %v614_v10  ;;  %v341_v37 = vmax.f32 %v315_v6, %v316_v7  ;;  %v338_v38 = vmax.f32 %v313_v11, %v314_v15  ;;  %vm640_vm1 = vcmp.lt.s32.totalorder %v235_v12, 256  ;;  %s1965_s30 = sld [smem:[#allocation8 + $0x9]]  ;;  %p3212_p0 = scmp.ne.s32.totalorder %s3195_s27, 0 }
  0x5c   : > { %328 = vadd.xlane.f32.xlu0 %v327_v13  ;;  %325 = vadd.xlane.f32.xlu1 %v324_v14  ;;  %v585_v26 = vadd.f32 %v584_v20, %v319_v0  ;;  %v594_v27 = vadd.f32 %v593_v21, %v320_v1  ;;  %v607_v28 = vrot.slane %v606_v22, 4  ;;  %v630_v56 = vsub.s32 %v627_v43, %v2489_v47  ;;  %s1953_s12 = sld [smem:[#allocation8 + $0xf]] }
  0x5d   : > { %v616_v29 = vrot.slane %v615_v23, 4  ;;  %v684_v3 = vstv %s1938_s26  ;;  %v695_v6 = vstv %s1939_s29  ;;  %s1966_s13 = sld [smem:[#allocation8 + $0x3a]]  ;;  %vm354_vm4 = vcmask 261120  }
  0x5e   : > { %v586_v30 = vrot.slane %v585_v26, 4  ;;  %v595_v33 = vrot.slane %v594_v27, 4  ;;  %v608_v34 = vmax.f32 %v606_v22, %v607_v28  ;;  %v674_v7 = vstv %s1937_s9  ;;  %s1979_s14 = sld [smem:[#allocation8 + $0xa]] }
  0x5f   : > { %v617_v35 = vmax.f32 %v615_v23, %v616_v29  ;;  %v837_v10 = vstv %s1951_s20  ;;  %s1940_s23 = sld [smem:[#allocation8 + $0x3f]]  ;;  %vm680_vm5 = vcmask 916480   ;;  %vm701_vm6 = vcmask 785408  }
  0x60   : > { %345 = vmax.xlane.f32.xlu0 %v344_v24  ;;  %v587_v36 = vadd.f32 %v586_v30, %v585_v26  ;;  %322 = vadd.xlane.f32.xlu1 %v321_v25  ;;  %v596_v39 = vadd.f32 %v595_v33, %v594_v27  ;;  %v609_v40 = vrot.slane %v608_v34, 2  ;;  %v846_v11 = vstv %s1952_s25  ;;  %s1954_s5 = sld [smem:[#allocation8 + $0x40]] }
  0x61   : > { %v618_v41 = vrot.slane %v617_v35, 2  ;;  %v993_v17 = vstv %s1965_s30  ;;  %s1967_s10 = sld [smem:[#allocation8 + $0x10]]  ;;  %vm722_vm7 = vcmask 654336   ;;  %vm744_vm8 = vcmask 523264  }
  0x62   : > { %v588_v42 = vrot.slane %v587_v36, 2  ;;  %v597_v44 = vrot.slane %v596_v39, 2  ;;  %v610_v45 = vmax.f32 %v608_v34, %v609_v40  ;;  %v857_v18 = vstv %s1953_s12  ;;  %s1993_s26 = sld [smem:[#allocation8 + $0xb]] }
  0x63   : > { %v619_v46 = vmax.f32 %v617_v35, %v618_v41  ;;  %v1002_v21 = vstv %s1966_s13  ;;  %s1980_s29 = sld [smem:[#allocation8 + $0x3b]]  ;;  %vm429_vm9 = vcmask 15360   ;;  %vm766_vm10 = vcmask 392192  }
  0x64   : > { %v589_v48 = vadd.f32 %v588_v42, %v587_v36  ;;  %342 = vmax.xlane.f32.xlu0 %v341_v37  ;;  %339 = vmax.xlane.f32.xlu1 %v338_v38  ;;  %v598_v49 = vadd.f32 %v597_v44, %v596_v39  ;;  %v611_v50 = vrot.slane %v610_v45, 1  ;;  %v1149_v22 = vstv %s1979_s14  ;;  %s1941_s9 = sld [smem:[#allocation8 + $0x15]] }
  0x65   : > { %v620_v51 = vrot.slane %v619_v46, 1  ;;  %v705_v25 = vstv %s1940_s23  ;;  %s1955_s20 = sld [smem:[#allocation8 + $0x16]]  ;;  %s3182_s23 = smov 80   ;;  %vm442_vm11 = vcmask 1041408   ;;  %vm818_vm12 = vcmask 416768  }
  0x66   : > { %v590_v52 = vrot.slane %v589_v48, 1  ;;  %v599_v53 = vrot.slane %v598_v49, 1  ;;  %v612_v54 = vmax.f32 %v610_v45, %v611_v50  ;;  %v866_v26 = vstv %s1954_s5  ;;  %s1968_s25 = sld [smem:[#allocation8 + $0x41]] }
  0x67   : > { %v621_v55 = vmax.f32 %v619_v46, %v620_v51  ;;  %v1013_v29 = vstv %s1967_s10  ;;  %s1994_s30 = sld [smem:[#allocation8 + $0x3c]]  ;;  %vm974_vm13 = vcmask 408576   ;;  %vm1130_vm0 = vcmask 400384  }
  0x68   : > { %v591_v57 = vadd.f32 %v590_v52, %v589_v48  ;;  %v600_v58 = vadd.f32 %v599_v53, %v598_v49  ;;  %v1306_v30 = vstv %s1993_s26  ;;  %s2007_s12 = sld [smem:[#allocation8 + $0xc]] }
  0x69   : > { %v645_v59 = vcombine.low %v612_v54, %v621_v55  ;;  %v1158_v33 = vstv %s1980_s29  ;;  %s1981_s13 = sld [smem:[#allocation8 + $0x11]] }
  0x6a   : > { %v602_v60 = vmul.f32 0.03125, %v591_v57  ;;  %v603_v61 = vmul.f32 0.03125, %v600_v58  ;;  %v716_v34 = vstv %s1941_s9  ;;  %s1942_s14 = sld [smem:[#allocation8 + $0x46]] }
  0x6b   : > { %v652_v62 = vrot.slane %v645_v59, %v630_v56  ;;  %v877_v37 = vstv %s1955_s20  ;;  %s1956_s5 = sld [smem:[#allocation8 + $0x47]] }
  0x6c   : > { %v624_v63 = vcombine.low %v602_v60, %v603_v61  ;;  %v1022_v38 = vstv %s1968_s25  ;;  %s1969_s10 = sld [smem:[#allocation8 + $0x17]] }
  0x6d   : > { %v659_v0 = vrot.slane %v652_v62, %v630_v56  ;;  %v1315_v41 = vstv %s1994_s30  ;;  %s1995_s26 = sld [smem:[#allocation8 + $0x12]] }
  0x6e   : > { %v631_v1 = vrot.slane %v624_v63, %v630_v56  ;;  %v1462_v42 = vstv %s2007_s12  ;;  %s2008_s29 = sld [smem:[#allocation8 + $0x3d]] }
  0x6f   : > { %661 = vst.msk [vmem:[#allocation3 + $0x1] sm:$0x3] %vm640_vm1, %v659_v0  ;;  %v1169_v45 = vstv %s1981_s13  ;;  %s2021_s9 = sld [smem:[#allocation8 + $0xd]] }
  0x70   : > { %v638_v2 = vrot.slane %v631_v1, %v630_v56  ;;  %v726_v46 = vstv %s1942_s14  ;;  %s1982_s20 = sld [smem:[#allocation8 + $0x42]] }
  0x71   : > { %v886_v50 = vstv %s1956_s5  ;;  %s1943_s25 = sld [smem:[#allocation8 + $0x1c]] }
  0x72   : > { %642 = vst.msk [vmem:[#allocation2 + $0x1] sm:$0x3] %vm640_vm1, %v638_v2  ;;  %v1033_v51 = vstv %s1969_s10  ;;  %s1957_s30 = sld [smem:[#allocation8 + $0x1d]] }
  0x73   : > { %v1326_v54 = vstv %s1995_s26  ;;  %s1970_s12 = sld [smem:[#allocation8 + $0x48]] }
  0x74   : > { %v1471_v55 = vstv %s2008_s29  ;;  %s1996_s13 = sld [smem:[#allocation8 + $0x43]]  ;;  %s3183_s29 = smov 64  }
  0x75   : > { %v1618_v58 = vstv %s2021_s9  ;;  %s2009_s14 = sld [smem:[#allocation8 + $0x13]] }
  0x76   : > { %v2494_v4 = vld [vmem:[#allocation3] sm:$0x7]  ;;  %v1178_v59 = vstv %s1982_s20  ;;  %s2022_s5 = sld [smem:[#allocation8 + $0x3e]] }
  0x77   : > { %v685_v5 = vmul.f32 %v684_v3, %v2494_v4  ;;  %v847_v16 = vmul.f32 %v846_v11, %v2494_v4  ;;  %v1003_v23 = vmul.f32 %v1002_v21, %v2494_v4  ;;  %v706_v27 = vmul.f32 %v705_v25, %v2494_v4  ;;  %s1983_s10 = sld [smem:[#allocation8 + $0x18]] }
  0x78   : > { %v867_v28 = vmul.f32 %v866_v26, %v2494_v4  ;;  %v1159_v35 = vmul.f32 %v1158_v33, %v2494_v4  ;;  %v1023_v40 = vmul.f32 %v1022_v38, %v2494_v4  ;;  %v1316_v43 = vmul.f32 %v1315_v41, %v2494_v4  ;;  %s1944_s26 = sld [smem:[#allocation8 + $0x4d]] }
  0x79   : > { %687 = vrot.lane.b32.xlu1 %v685_v5, %s2298_s8  ;;  %v2498_v9 = vld [vmem:[#allocation2] sm:$0x7]  ;;  %v727_v49 = vmul.f32 %v726_v46, %v2494_v4  ;;  %v887_v52 = vmul.f32 %v886_v50, %v2494_v4  ;;  %v1472_v57 = vmul.f32 %v1471_v55, %v2494_v4  ;;  %v1179_v61 = vmul.f32 %v1178_v59, %v2494_v4  ;;  %s1958_s9 = sld [smem:[#allocation8 + $0x4e]] }
  0x7a   : > { %v696_v13 = vmul.f32 %v695_v6, %v2498_v9  ;;  %v675_v14 = vmul.f32 %v674_v7, %v2498_v9  ;;  %v838_v15 = vmul.f32 %v837_v10, %v2498_v9  ;;  %v994_v19 = vmul.f32 %v993_v17, %v2498_v9  ;;  %v2550_v62 = vld [vmem:[#allocation2 + $0x1] sm:$0x7]  ;;  %s1971_s20 = sld [smem:[#allocation8 + $0x1e]] }
  0x7b   : > { %v858_v20 = vmul.f32 %v857_v18, %v2498_v9  ;;  %v1150_v24 = vmul.f32 %v1149_v22, %v2498_v9  ;;  %v1014_v31 = vmul.f32 %v1013_v29, %v2498_v9  ;;  %v1307_v32 = vmul.f32 %v1306_v30, %v2498_v9  ;;  %v2564_v18 = vld [vmem:[#allocation3 + $0x1] sm:$0x7]  ;;  %s3207_s1 = sld [smem:[#allocation15_spill]] }
  0x7c   : > { %677 = vrot.lane.b32.xlu0 %v675_v14, %s2298_s8  ;;  %v717_v36 = vmul.f32 %v716_v34, %v2498_v9  ;;  %v878_v39 = vmul.f32 %v877_v37, %v2498_v9  ;;  %v1463_v44 = vmul.f32 %v1462_v42, %v2498_v9  ;;  %v1170_v48 = vmul.f32 %v1169_v45, %v2498_v9  ;;  %v1199_v30 = vld [vmem:[#allocation3 + $0x1] sm:$0x3]  ;;  %s2692_s0 = sld [smem:[#allocation8 + $0x57]] }
  0x7d   : > { %698 = vrot.lane.b32.xlu1 %v696_v13, %s2299_s22  ;;  %v1034_v53 = vmul.f32 %v1033_v51, %v2498_v9  ;;  %v1327_v56 = vmul.f32 %v1326_v54, %v2498_v9  ;;  %v1619_v60 = vmul.f32 %v1618_v58, %v2498_v9  ;;  %v738_v63 = vstv %s1943_s25  ;;  %s1997_s25 = sld [smem:[#allocation8 + $0x19]] }
  0x7e   : > { %v897_v0 = vstv %s1957_s30  ;;  %v739_v1 = vmul.f32 %v738_v63, %v2550_v62  ;;  %v1042_v3 = vstv %s1970_s12  ;;  %v1335_v5 = vstv %s1996_s13  ;;  %s2010_s30 = sld [smem:[#allocation8 + $0x44]] }
  0x7f   : > { %v898_v2 = vmul.f32 %v897_v0, %v2550_v62  ;;  %v1043_v6 = vmul.f32 %v1042_v3, %v2494_v4  ;;  %v1336_v7 = vmul.f32 %v1335_v5, %v2494_v4  ;;  %v1482_v10 = vstv %s2009_s14  ;;  %s2023_s12 = sld [smem:[#allocation8 + $0x14]] }
  0x80   : > { %849 = vrot.lane.b32.xlu0 %v847_v16, %s2298_s8  ;;  %v1627_v11 = vstv %s2022_s5  ;;  %v1483_v13 = vmul.f32 %v1482_v10, %v2498_v9  ;;  %v1190_v16 = vstv %s1983_s10  ;;  %v749_v17 = vstv %s1944_s26  ;;  %s1984_s13 = sld [smem:[#allocation8 + $0x49]] }
  0x81   : > { %840 = vrot.lane.b32.xlu1 %v838_v15, %s2298_s8  ;;  %v1628_v14 = vmul.f32 %v1627_v11, %v2494_v4  ;;  %v1189_v15 = vld [vmem:[#allocation2 + $0x1] sm:$0x3]  ;;  %v906_v21 = vstv %s1958_s9  ;;  %v1053_v22 = vstv %s1971_s20  ;;  %s1945_s14 = sld [smem:[#allocation8 + $0x23]] }
  0x82   : > { %s1959_s5 = sld [smem:[#allocation8 + $0x24]] }
  0x83   : > { %v1346_v25 = vstv %s1997_s25  ;;  %s1998_s10 = sld [smem:[#allocation8 + $0x4a]] }
  0x84   : > { %860 = vrot.lane.b32.xlu0 %v858_v20, %s2299_s22  ;;  %v750_v20 = vmul.f32 %v749_v17, %v2564_v18  ;;  %v1491_v26 = vstv %s2010_s30  ;;  %s2011_s26 = sld [smem:[#allocation8 + $0x1a]]  ;;  %s3187_s30 = smov 48  }
  0x85   : > { %996 = vrot.lane.b32.xlu1 %v994_v19, %s2298_s8  ;;  %v1191_v19 = vmul.f32 %v1190_v16, %v1189_v15  ;;  %v1638_v29 = vstv %s2023_s12  ;;  %s2024_s9 = sld [smem:[#allocation8 + $0x45]] }
  0x86   : > { %s1985_s20 = sld [smem:[#allocation8 + $0x1f]] }
  0x87   : > { %v760_v34 = vstv %s1945_s14  ;;  %s1946_s25 = sld [smem:[#allocation8 + $0x54]] }
  0x88   : > { %1152 = vrot.lane.b32.xlu0 %v1150_v24, %s2298_s8  ;;  %v1054_v24 = vmul.f32 %v1053_v22, %v2550_v62  ;;  %s1960_s12 = sld [smem:[#allocation8 + $0x55]] }
  0x89   : > { %1005 = vrot.lane.b32.xlu1 %v1003_v23, %s2298_s8  ;;  %v907_v23 = vmul.f32 %v906_v21, %v2564_v18  ;;  %s1999_s14 = sld [smem:[#allocation8 + $0x20]] }
  0x8a   : > { %v1502_v42 = vstv %s2011_s26  ;;  %s2600_s26 = sld [smem:[#allocation8 + $0x2a]] }
  0x8b   : > { %s2705_s24 = sld [smem:[#allocation8 + $0x35]] }
  0x8c   : > { %869 = vrot.lane.b32.xlu0 %v867_v28, %s2299_s22  ;;  %v1492_v28 = vmul.f32 %v1491_v26, %v2494_v4  ;;  %v1211_v46 = vstv %s1985_s20  ;;  %s2613_s20 = sld [smem:[#allocation8 + $0x51]] }
  0x8d   : > { %708 = vrot.lane.b32.xlu1 %v706_v27, %s2299_s22  ;;  %v1347_v27 = vmul.f32 %v1346_v25, %v2550_v62 }
  0x8e   : > { %v926_v51 = vstv %s1960_s12  ;;  %s2621_s12 = sld [smem:[#allocation8 + $0x1]] }
  0x8f   : > { %v1366_v55 = vstv %s1999_s14  ;;  %s2628_s14 = sld [smem:[#allocation8 + $0x4c]] }
  0x90   : > { %1309 = vrot.lane.b32.xlu0 %v1307_v32, %s2298_s8  ;;  %v1639_v32 = vmul.f32 %v1638_v29, %v2498_v9  ;;  %v1367_v58 = vmul.f32 %v1366_v55, %v2550_v62 }
  0x91   : > { %1016 = vrot.lane.b32.xlu1 %v1014_v31, %s2299_s22  ;;  %v1200_v31 = vstv %s1984_s13  ;;  %s1973_s13 = sld [smem:[#allocation8 + $0x25]] }
  0x92   : > { %v1201_v33 = vmul.f32 %v1200_v31, %v1199_v30  ;;  %v1375_v15 = vstv %s2613_s20  ;;  %s2658_s20 = sld [smem:[#allocation8 + $0x5c]] }
  0x94   : > { %719 = vrot.lane.b32.xlu0 %v717_v36, %s3182_s23  ;;  %v761_v36 = vmul.f32 %v760_v34, %v2550_v62 }
  0x95   : > { %1161 = vrot.lane.b32.xlu1 %v1159_v35, %s2298_s8  ;;  %v917_v35 = vstv %s1959_s5  ;;  %s2012_s5 = sld [smem:[#allocation8 + $0x4b]] }
  0x96   : > { %v918_v37 = vmul.f32 %v917_v35, %v2550_v62 }
  0x98   : > { %1025 = vrot.lane.b32.xlu0 %v1023_v40, %s2299_s22 }
  0x99   : > { %880 = vrot.lane.b32.xlu1 %v878_v39, %s3182_s23  ;;  %v1355_v39 = vstv %s1998_s10  ;;  %s1986_s10 = sld [smem:[#allocation8 + $0x50]] }
  0x9a   : > { %v1356_v41 = vmul.f32 %v1355_v39, %v2564_v18 }
  0x9c   : > { %1465 = vrot.lane.b32.xlu0 %v1463_v44, %s2298_s8  ;;  %v1503_v44 = vmul.f32 %v1502_v42, %v2550_v62 }
  0x9d   : > { %1318 = vrot.lane.b32.xlu1 %v1316_v43, %s2298_s8  ;;  %v1647_v43 = vstv %s2024_s9  ;;  %s2602_s9 = sld [smem:[#allocation8 + $0x2b]] }
  0x9e   : > { %v1648_v45 = vmul.f32 %v1647_v43, %v2494_v4 }
  0xa0   : > { %729 = vrot.lane.b32.xlu0 %v727_v49, %s3182_s23  ;;  %v1212_v49 = vmul.f32 %v1211_v46, %v2550_v62 }
  0xa1   : > { %1172 = vrot.lane.b32.xlu1 %v1170_v48, %s2299_s22  ;;  %v770_v48 = vstv %s1946_s25  ;;  %s2615_s25 = sld [smem:[#allocation8 + $0x21]] }
  0xa2   : > { %v771_v50 = vmul.f32 %v770_v48, %v2564_v18 }
  0xa3   : > { %v937_v5 = vstv %s2602_s9  ;;  %s2647_s9 = sld [smem:[#allocation8]] }
  0xa4   : > { %1036 = vrot.lane.b32.xlu0 %v1034_v53, %s3182_s23  ;;  %v927_v53 = vmul.f32 %v926_v51, %v2564_v18 }
  0xa5   : > { %889 = vrot.lane.b32.xlu1 %v887_v52, %s3182_s23  ;;  %v1073_v52 = vstv %s1973_s13  ;;  %s2625_s13 = sld [smem:[#allocation8 + $0x32]] }
  0xa6   : > { %v1074_v54 = vmul.f32 %v1073_v52, %v2550_v62  ;;  %v829_v52 = vstv %s2621_s12  ;;  %s2750_s12 = sld [smem:[#allocation8 + $0x2e]] }
  0xa7   : > { %v1522_v22 = vstv %s2615_s25  ;;  %s2668_s25 = sld [smem:[#allocation8 + $0x22]] }
  0xa8   : > { %1474 = vrot.lane.b32.xlu0 %v1472_v57, %s2298_s8  ;;  %v2605_v57 = vand.u32 127, %v235_v12  ;;  %v1523_v29 = vmul.f32 %v1522_v22, %v2550_v62 }
  0xa9   : > { %1329 = vrot.lane.b32.xlu1 %v1327_v56, %s2299_s22  ;;  %v1511_v56 = vstv %s2012_s5  ;;  %s2632_s5 = sld [smem:[#allocation8 + $0x26]]  ;;  %v665_v39 = vstv %s2647_s9  ;;  %s3209_s9 = smov 48  }
  0xaa   : > { %v1512_v59 = vmul.f32 %v1511_v56, %v2564_v18  ;;  %vm304_vm3 = vcmp.eq.s32.totalorder %v2605_v57, 0 }
  0xac   : > { %1181 = vrot.lane.b32.xlu0 %v1179_v61, %s2299_s22  ;;  %v1220_v61 = vstv %s1986_s10  ;;  %s2642_s10 = sld [smem:[#allocation8 + $0x33]] }
  0xad   : > { %1621 = vrot.lane.b32.xlu1 %v1619_v60, %s2298_s8  ;;  %v1221_v3 = vmul.f32 %v1220_v61, %v2564_v18 }
  0xaf   : > { %v1231_v31 = vstv %s2632_s5  ;;  %s2686_s5 = sld [smem:[#allocation8 + $0x34]] }
  0xb0   : > { %900 = vrot.lane.b32.xlu0 %v898_v2, %s3183_s29  ;;  %v781_v2 = vstv %s2600_s26  ;;  %s2645_s26 = sld [smem:[#allocation8 + $0x5b]] }
  0xb1   : > { %741 = vrot.lane.b32.xlu1 %v739_v1, %s3183_s29  ;;  %v782_v11 = vmul.f32 %v781_v2, %v2550_v62 }
  0xb2   : > { %v988_v56 = vstv %s2642_s10  ;;  %s2804_s10 = sld [smem:[#allocation8 + $0x5f]] }
  0xb4   : > { %1338 = vrot.lane.b32.xlu0 %v1336_v7, %s2299_s22 }
  0xb5   : > { %1045 = vrot.lane.b32.xlu1 %v1043_v6, %s3182_s23 }
  0xb6   : > { %v790_v34 = vstv %s2645_s26  ;;  %s2700_s26 = sld [smem:[#allocation8 + $0x5d]] }
  0xb8   : > { %1630 = vrot.lane.b32.xlu0 %v1628_v14, %s2298_s8  ;;  %s1972_s8 = sld [smem:[#allocation8 + $0x4f]]  ;;  %v938_v14 = vmul.f32 %v937_v5, %v2550_v62 }
  0xb9   : > { %1485 = vrot.lane.b32.xlu1 %v1483_v13, %s2299_s22 }
  0xbc   : > { %752 = vrot.lane.b32.xlu0 %v750_v20, %s3183_s29 }
  0xbd   : > { %1193 = vrot.lane.b32.xlu1 %v1191_v19, %s3182_s23 }
  0xbe   : > { %v1062_v38 = vstv %s1972_s8  ;;  %s2025_s8 = sld [smem:[#allocation8 + $0x1b]] }
  0xbf   : > { %v1063_v40 = vmul.f32 %v1062_v38, %v2564_v18 }
  0xc0   : > { %1056 = vrot.lane.b32.xlu0 %v1054_v24, %s3183_s29  ;;  %v1667_v24 = vstv %s2628_s14  ;;  %s3206_s14 = smov 64  }
  0xc1   : > { %909 = vrot.lane.b32.xlu1 %v907_v23, %s3183_s29  ;;  %v1376_v23 = vmul.f32 %v1375_v15, %v2564_v18 }
  0xc4   : > { %1494 = vrot.lane.b32.xlu0 %v1492_v28, %s2299_s22  ;;  %v1658_v60 = vstv %s2025_s8  ;;  %s2636_s8 = sld [smem:[#allocation8 + $0x2]] }
  0xc5   : > { %1349 = vrot.lane.b32.xlu1 %v1347_v27, %s3182_s23  ;;  %v1659_v0 = vmul.f32 %v1658_v60, %v2550_v62 }
  0xc8   : > { %1203 = vrot.lane.b32.xlu0 %v1201_v33, %s3182_s23  ;;  %v230_v33 = vld [vmem:[%s3207_s1] sm:$0x3]  ;;  %s2703_s1 = sld [smem:[#allocation8 + $0x4]] }
  0xc9   : > { %1641 = vrot.lane.b32.xlu1 %v1639_v32, %s2299_s22  ;;  %v1668_v32 = vmul.f32 %v1667_v24, %v2564_v18 }
  0xca   : > { %v985_v55 = vstv %s2636_s8  ;;  %s2789_s8 = sld [smem:[#allocation8 + $0x29]] }
  0xcc   : > { %920 = vrot.lane.b32.xlu0 %v918_v37, %s3187_s30  ;;  %v1232_v37 = vmul.f32 %v1231_v31, %v2550_v62 }
  0xcd   : > { %763 = vrot.lane.b32.xlu1 %v761_v36, %s3187_s30 }
  0xd0   : > { %1358 = vrot.lane.b32.xlu0 %v1356_v41, %s3182_s23  ;;  %v791_v41 = vmul.f32 %v790_v34, %v2564_v18 }
  0xd1   : > { %1065 = vrot.lane.b32.xlu1 %v1063_v40, %s3183_s29  ;;  %v946_v40 = vstv %s2658_s20  ;;  %s2726_s20 = sld [smem:[#allocation8 + $0x28]] }
  0xd2   : > { %v947_v46 = vmul.f32 %v946_v40, %v2564_v18 }
  0xd4   : > { %1650 = vrot.lane.b32.xlu0 %v1648_v45, %s2299_s22  ;;  %s2611_s22 = sld [smem:[#allocation8 + $0x56]]  ;;  %v666_v45 = vmul.f32 %v665_v39, %v2498_v9 }
  0xd5   : > { %1505 = vrot.lane.b32.xlu1 %v1503_v44, %s3182_s23 }
  0xd8   : > { %773 = vrot.lane.b32.xlu0 %v771_v50, %s3187_s30 }
  0xd9   : > { %1214 = vrot.lane.b32.xlu1 %v1212_v49, %s3183_s29 }
  0xda   : > { %v1082_v13 = vstv %s2611_s22  ;;  %s2651_s22 = sld [smem:[#allocation8 + $0x31]] }
  0xdb   : > { %v1083_v20 = vmul.f32 %v1082_v13, %v2564_v18  ;;  %v1144_v13 = vstv %s2686_s5  ;;  %s2823_s5 = sld [smem:[#allocation8 + $0x5a]] }
  0xdc   : > { %1076 = vrot.lane.b32.xlu0 %v1074_v54, %s3187_s30  ;;  %v832_v54 = vstv %s2625_s13  ;;  %s2785_s13 = sld [smem:[#allocation8 + $0x5e]] }
  0xdd   : > { %929 = vrot.lane.b32.xlu1 %v927_v53, %s3187_s30  ;;  %v833_v5 = vmul.f32 %v832_v54, %v2494_v4 }
  0xe0   : > { %1514 = vrot.lane.b32.xlu0 %v1512_v59, %s3182_s23 }
  0xe1   : > { %v349_v12 = vpop.xlane.xlu1 %348  ;;  %v332_v63 = vpop.xlane.xlu0 %331  ;;  %1369 = vrot.lane.b32.xlu1 %v1367_v58, %s3183_s29  ;;  %v1678_v58 = vstv %s2668_s25  ;;  %s2818_s25 = sld [smem:[#allocation8 + $0x2f]] }
  0xe2   : > { %v337_v1 = vmul.f32 0.00390625, %v332_v63  ;;  %v1240_v63 = vstv %s2692_s0  ;;  %s2837_s0 = sld [smem:[#allocation8 + $0x30]] }
  0xe3   : > { %v1241_v15 = vmul.f32 %v1240_v63, %v2564_v18 }
  0xe4   : > { %v353_v6 = vsel %vm304_vm3, %v337_v1, %v349_v12  ;;  %1223 = vrot.lane.b32.xlu0 %v1221_v3, %s3183_s29  ;;  %s2664_s29 = sld [smem:[#allocation8 + $0x27]]  ;;  %v830_v1 = vmul.f32 %v829_v52, %v2498_v9  ;;  %v1406_v52 = vstv %s2750_s12  ;;  %s2306_s12 = smov 49  }
  0xe5   : > { %v329_v7 = vpop.xlane.xlu0 %328  ;;  %v326_v10 = vpop.xlane.xlu1 %325  ;;  %2051 = vmatpush3.msra.mxu0 %v353_v6  ;;  %1661 = vrot.lane.b32.xlu1 %v1659_v0, %s3182_s23  ;;  %s2661_s23 = sld [smem:[#allocation8 + $0x2c]]  ;;  %v986_v6 = vmul.f32 %v985_v55, %v2498_v9 }
  0xe6   : > { %2052 = vmatprep.subr.mxu0 %v2295_v8  ;;  %v336_v16 = vmul.f32 0.00390625, %v329_v7  ;;  %v335_v25 = vmul.f32 0.00390625, %v326_v10  ;;  %v989_v7 = vmul.f32 %v988_v56, %v2494_v4  ;;  %v1679_v10 = vmul.f32 %v1678_v58, %v2550_v62 }
  0xe8   : > { %940 = vrot.lane.b32.xlu0 %v938_v14, %s3185_s7  ;;  %v1102_v14 = vstv %s2700_s26  ;;  %s2853_s26 = sld [smem:[#allocation8 + $0x6]] }
  0xe9   : > { %v346_v17 = vpop.xlane.xlu0 %345  ;;  %v323_v19 = vpop.xlane.xlu1 %322  ;;  %784 = vrot.lane.b32.xlu1 %v782_v11, %s3185_s7  ;;  %s2675_s7 = sld [smem:[#allocation8 + $0x3]]  ;;  %v1103_v31 = vmul.f32 %v1102_v14, %v2564_v18 }
  0xea   : > { %v352_v21 = vsel %vm304_vm3, %v336_v16, %v346_v17  ;;  %v334_v26 = vmul.f32 0.00390625, %v323_v19  ;;  %v1386_v50 = vstv %s2664_s29  ;;  %s2733_s29 = sld [smem:[#allocation8 + $0x53]] }
  0xeb   : > { %2053 = vmatpush3.msra.mxu0 %v352_v21  ;;  %v1093_v42 = vstv %s2661_s23  ;;  %s2715_s23 = sld [smem:[#allocation8 + $0x58]]  ;;  %v1387_v61 = vmul.f32 %v1386_v50, %v2550_v62  ;;  %v1301_v21 = vstv %s2705_s24 }
  0xec   : > { %2054 = vmatprep.subr.mxu0 %v2295_v8  ;;  %1378 = vrot.lane.b32.xlu0 %v1376_v23, %s3206_s14  ;;  %v1094_v51 = vmul.f32 %v1093_v42, %v2550_v62  ;;  %v1302_v34 = vmul.f32 %v1301_v21, %v2494_v4  ;;  %s2772_s24 = sld [smem:[#allocation8 + $0x36]] }
  0xed   : > { %v343_v27 = vpop.xlane.xlu0 %342  ;;  %v340_v28 = vpop.xlane.xlu1 %339  ;;  %1085 = vrot.lane.b32.xlu1 %v1083_v20, %s3187_s30  ;;  %s2681_s30 = sld [smem:[#allocation8 + $0x52]]  ;;  %v1298_v20 = vstv %s2703_s1 }
  0xee   : > { %v351_v30 = vsel %vm304_vm3, %v335_v25, %v343_v27  ;;  %v350_v35 = vsel %vm304_vm3, %v334_v26, %v340_v28  ;;  %v834_v27 = vadd.f32 %v833_v5, %v830_v1  ;;  %v990_v28 = vadd.f32 %v989_v7, %v986_v6  ;;  %s2766_s1 = sld [smem:[#allocation8 + $0x5]] }
  0xef   : > { %2055 = vmatpush3.msra.mxu0 %v351_v30  ;;  %v1141_v11 = vstv %s2675_s7  ;;  %s2762_s7 = sld [smem:[#allocation8 + $0x59]]  ;;  %v1145_v30 = vmul.f32 %v1144_v13, %v2494_v4 }
  0xf0   : > { %2056 = vmatprep.subr.mxu0 %v2295_v8  ;;  %v669_v8 = vstv %s2651_s22  ;;  %1670 = vrot.lane.b32.xlu0 %v1668_v32, %s3208_s3  ;;  %s3210_s22 = smov 32   ;;  %v1542_v32 = vstv %s2726_s20  ;;  %s2846_s3 = sld [smem:[#allocation8 + $0x61]] }
  0xf1   : > { %2057 = vmatpush3.msra.mxu0 %v350_v35  ;;  %v2688_v36 = vpop.permute.xlu1 %687  ;;  %1525 = vrot.lane.b32.xlu1 %v1523_v29, %s3206_s14  ;;  %v678_v38 = vpop.permute.xlu0 %677  ;;  %v670_v44 = vmul.f32 %v669_v8, %v2494_v4  ;;  %v1395_v22 = vstv %s2715_s23  ;;  %v1142_v29 = vmul.f32 %v1141_v11, %v2498_v9  ;;  %v1687_v8 = vstv %s2733_s29  ;;  %s2856_s23 = sld [smem:[#allocation8 + $0x37]]  ;;  %s2304_s29 = smov 51  }
  0xf2   : > { %2059 = vmatmul.mubr.msk.f32.vlgmr.msra.gmra.mxu0 %vm354_vm4, %v230_v33  ;;  %v679_v49 = vrot.slane %v678_v38, 1  ;;  %v689_v0 = vrot.slane %v2688_v36, 1  ;;  %v1299_v33 = vmul.f32 %v1298_v20, %v2498_v9  ;;  %v1396_v39 = vmul.f32 %v1395_v22, %v2564_v18  ;;  %s1821_s20 = scalar_lea.sflag [#allocation6], %s2458_s6 }
  0xf3   : > { %v1531_v53 = vstv %s2681_s30  ;;  %v671_v60 = vadd.f32 %v670_v44, %v666_v45  ;;  %s2744_s30 = sld [smem:[#allocation8 + $0x2d]]  ;;  %v1146_v45 = vadd.f32 %v1145_v30, %v1142_v29 }
  0xf4   : > { %793 = vrot.lane.b32.xlu0 %v791_v41, %s3210_s22  ;;  %v681_v2 = vsel %vm680_vm5, %v678_v38, %v679_v49  ;;  %v1532_v3 = vmul.f32 %v1531_v53, %v2564_v18  ;;  %v690_v23 = vsel %vm680_vm5, %v2688_v36, %v689_v0 }
  0xf5   : > { %v2707_v43 = vpop.permute.xlu1 %698  ;;  %1234 = vrot.lane.b32.xlu1 %v1232_v37, %s3209_s9  ;;  %v2713_v48 = vpop.permute.xlu0 %849  ;;  %v683_v17 = vadd.f32 %v681_v2, %v671_v60  ;;  %v1551_v2 = vstv %s2762_s7  ;;  %s2307_s7 = smov 47  }
  0xf6   : > { %v700_v24 = vrot.slane %v2707_v43, 1  ;;  %v851_v37 = vrot.slane %v2713_v48, 1 }
  0xf7   : > { %v692_v35 = vadd.f32 %v690_v23, %v683_v17  ;;  %v1552_v23 = vmul.f32 %v1551_v2, %v2564_v18 }
  0xf8   : > { %1096 = vrot.lane.b32.xlu0 %v1094_v51, %s3210_s22  ;;  %v702_v40 = vsel %vm701_vm6, %v2707_v43, %v700_v24  ;;  %v1303_v51 = vadd.f32 %v1302_v34, %v1299_v33  ;;  %v1688_v43 = vmul.f32 %v1687_v8, %v2564_v18  ;;  %v852_v55 = vsel %vm680_vm5, %v2713_v48, %v851_v37 }
  0xf9   : > { %v841_v59 = vpop.permute.xlu1 %840  ;;  %949 = vrot.lane.b32.xlu1 %v947_v46, %s3210_s22  ;;  %v2730_v12 = vpop.permute.xlu0 %860  ;;  %v1543_v46 = vmul.f32 %v1542_v32, %v2550_v62  ;;  %v1251_v49 = vstv %s2744_s30  ;;  %v704_v58 = vadd.f32 %v702_v40, %v692_v35  ;;  %v1454_v48 = vstv %s2766_s1  ;;  %s2305_s30 = smov 50   ;;  %s2309_s1 = smov 45  }
  0xfa   : > { %v842_v25 = vrot.slane %v841_v59, 1  ;;  %v862_v50 = vrot.slane %v2730_v12, 1  ;;  %v1252_v1 = vmul.f32 %v1251_v49, %v2550_v62  ;;  %v1260_v24 = vstv %s2785_s13 }
  0xfc   : > { %1534 = vrot.lane.b32.xlu0 %v1532_v3, %s3206_s14  ;;  %v843_v41 = vsel %vm680_vm5, %v841_v59, %v842_v25  ;;  %v1407_v3 = vmul.f32 %v1406_v52, %v2550_v62  ;;  %v863_v6 = vsel %vm701_vm6, %v2730_v12, %v862_v50  ;;  %v1698_v25 = vstv %s2789_s8 }
  0xfd   : > { %v997_v16 = vpop.permute.xlu1 %996  ;;  %1389 = vrot.lane.b32.xlu1 %v1387_v61, %s3209_s9  ;;  %v2753_v19 = vpop.permute.xlu0 %1152  ;;  %v845_v53 = vadd.f32 %v843_v41, %v834_v27  ;;  %v1261_v41 = vmul.f32 %v1260_v24, %v2564_v18 }
  0xfe   : > { %v998_v26 = vrot.slane %v997_v16, 1  ;;  %v1154_v63 = vrot.slane %v2753_v19, 1 }
  0xff   : > { %v854_v13 = vadd.f32 %v852_v55, %v845_v53  ;;  %v1707_v53 = vstv %s2823_s5 }
 0x100   : > { %v999_v42 = vsel %vm680_vm5, %v997_v16, %v998_v26  ;;  %1243 = vrot.lane.b32.xlu0 %v1241_v15, %s3209_s9  ;;  %v1155_v21 = vsel %vm680_vm5, %v2753_v19, %v1154_v63  ;;  %v1455_v19 = vmul.f32 %v1454_v48, %v2498_v9  ;;  %v1708_v2 = vmul.f32 %v1707_v53, %v2564_v18 }
 0x101   : > { %v1006_v36 = vpop.permute.xlu1 %1005  ;;  %1681 = vrot.lane.b32.xlu1 %v1679_v10, %s3206_s14  ;;  %v2776_v38 = vpop.permute.xlu0 %869  ;;  %v1001_v54 = vadd.f32 %v999_v42, %v990_v28  ;;  %v1457_v10 = vstv %s2772_s24  ;;  %v865_v29 = vadd.f32 %v863_v6, %v854_v13 }
 0x102   : > { %v1007_v44 = vrot.slane %v1006_v36, 1  ;;  %v871_v12 = vrot.slane %v2776_v38, 1  ;;  %v1458_v28 = vmul.f32 %v1457_v10, %v2494_v4  ;;  %v1415_v4 = vstv %s2804_s10 }
 0x103   : > { %v1416_v52 = vmul.f32 %v1415_v4, %v2564_v18 }
 0x104   : > { %v1008_v60 = vsel %vm680_vm5, %v1006_v36, %v1007_v44  ;;  %1398 = vrot.lane.b32.xlu0 %v1396_v39, %s3209_s9  ;;  %v872_v36 = vsel %vm701_vm6, %v2776_v38, %v871_v12  ;;  %v1699_v39 = vmul.f32 %v1698_v25, %v2550_v62 }
 0x105   : > { %v709_v56 = vpop.permute.xlu1 %708  ;;  %1105 = vrot.lane.b32.xlu1 %v1103_v31, %s3210_s22  ;;  %v1310_v59 = vpop.permute.xlu0 %1309  ;;  %v1010_v11 = vadd.f32 %v1008_v60, %v1001_v54  ;;  %v1157_v31 = vadd.f32 %v1155_v21, %v1146_v45  ;;  %v874_v38 = vadd.f32 %v872_v36, %v865_v29 }
 0x106   : > { %v710_v61 = vrot.slane %v709_v56, 1  ;;  %v1311_v0 = vrot.slane %v1310_v59, 1 }
 0x108   : > { %v711_v5 = vsel %vm701_vm6, %v709_v56, %v710_v61  ;;  %v1312_v7 = vsel %vm680_vm5, %v1310_v59, %v1311_v0  ;;  %1690 = vrot.lane.b32.xlu0 %v1688_v43, %s3206_s14  ;;  %s2834_s14 = sld [smem:[#allocation8 + $0x60]]  ;;  %v1562_v43 = vstv %s2818_s25 }
 0x109   : > { %v713_v14 = vadd.f32 %v711_v5, %v704_v58  ;;  %v1017_v15 = vpop.permute.xlu1 %1016  ;;  %1545 = vrot.lane.b32.xlu1 %v1543_v46, %s3209_s9  ;;  %v2812_v16 = vadd.f32 %v1312_v7, %v1303_v51  ;;  %v720_v17 = vpop.permute.xlu0 %719  ;;  %v1459_v46 = vadd.f32 %v1458_v28, %v1455_v19  ;;  %v1563_v61 = vmul.f32 %v1562_v43, %v2550_v62 }
 0x10a   : > { %v1018_v20 = vrot.slane %v1017_v15, 1  ;;  %v721_v22 = vrot.slane %v720_v17, 1  ;;  %v1613_v19 = vstv %s2856_s23 }
 0x10c   : > { %v1019_v26 = vsel %vm701_vm6, %v1017_v15, %v1018_v20  ;;  %v723_v27 = vsel %vm722_vm7, %v720_v17, %v721_v22  ;;  %1409 = vrot.lane.b32.xlu0 %v1407_v3, %s3210_s22  ;;  %v1718_v3 = vstv %s2837_s0  ;;  %v1727_v20 = vstv %s2846_s3  ;;  %s3211_s0 = sshll.u32 %s2458_s6, 6 }
 0x10d   : > { %v1021_v30 = vadd.f32 %v1019_v26, %v1010_v11  ;;  %v1162_v32 = vpop.permute.xlu1 %1161  ;;  %1254 = vrot.lane.b32.xlu1 %v1252_v1, %s3210_s22  ;;  %v725_v33 = vadd.f32 %v723_v27, %v713_v14  ;;  %v1026_v34 = vpop.permute.xlu0 %1025  ;;  %v1719_v17 = vmul.f32 %v1718_v3, %v2550_v62  ;;  %v1728_v25 = vmul.f32 %v1727_v20, %v2564_v18  ;;  %s3105_s3 = scalar_lea.vmem [#allocation9], %s3211_s0 }
 0x10e   : > { %v1163_v35 = vrot.slane %v1162_v32, 1  ;;  %v1027_v37 = vrot.slane %v1026_v34, 1  ;;  %v1571_v1 = vstv %s2834_s14  ;;  %v1610_v27 = vstv %s2853_s26  ;;  %s2039_s14 = sshll.u32 %s2359_s19, 10  ;;  %s1834_s26 = sshll.u32 %s3105_s3, 4  ;;  %s3121_s26 = int_to_ptr.vmem [resolvable:$true] %s1834_s26 }
 0x10f   : > { %v1572_v13 = vmul.f32 %v1571_v1, %v2564_v18 }
 0x110   : > { %v1164_v8 = vsel %vm680_vm5, %v1162_v32, %v1163_v35  ;;  %v1028_v40 = vsel %vm701_vm6, %v1026_v34, %v1027_v37  ;;  %1701 = vrot.lane.b32.xlu0 %v1699_v39, %s3209_s9  ;;  %v1611_v32 = vmul.f32 %v1610_v27, %v2498_v9 }
 0x111   : > { %v1166_v42 = vadd.f32 %v1164_v8, %v1157_v31  ;;  %v881_v44 = vpop.permute.xlu1 %880  ;;  %1554 = vrot.lane.b32.xlu1 %v1552_v23, %s3209_s9  ;;  %v1030_v45 = vadd.f32 %v1028_v40, %v1021_v30  ;;  %v1466_v49 = vpop.permute.xlu0 %1465 }
 0x112   : > { %v882_v50 = vrot.slane %v881_v44, 1  ;;  %v1467_v51 = vrot.slane %v1466_v49, 1 }
 0x114   : > { %v883_v54 = vsel %vm722_vm7, %v881_v44, %v882_v50  ;;  %v1468_v55 = vsel %vm680_vm5, %v1466_v49, %v1467_v51  ;;  %1418 = vrot.lane.b32.xlu0 %v1416_v52, %s3210_s22 }
 0x115   : > { %v885_v56 = vadd.f32 %v883_v54, %v874_v38  ;;  %v1319_v58 = vpop.permute.xlu1 %1318  ;;  %1263 = vrot.lane.b32.xlu1 %v1261_v41, %s3210_s22  ;;  %v1470_v59 = vadd.f32 %v1468_v55, %v1459_v46  ;;  %v730_v60 = vpop.permute.xlu0 %729 }
 0x116   : > { %v1320_v63 = vrot.slane %v1319_v58, 1  ;;  %v731_v0 = vrot.slane %v730_v60, 1 }
 0x118   : > { %v1321_v48 = vsel %vm680_vm5, %v1319_v58, %v1320_v63  ;;  %v732_v5 = vsel %vm722_vm7, %v730_v60, %v731_v0  ;;  %1710 = vrot.lane.b32.xlu0 %v1708_v2, %s3209_s9 }
 0x119   : > { %v1323_v6 = vadd.f32 %v1321_v48, %v2812_v16  ;;  %v1173_v7 = vpop.permute.xlu1 %1172  ;;  %v2864_v10 = vadd.f32 %v732_v5, %v725_v33  ;;  %1565 = vrot.lane.b32.xlu1 %v1563_v61, %s3210_s22  ;;  %v1037_v11 = vpop.permute.xlu0 %1036  ;;  %v2169_v33 = vld [vmem:[#allocation3] sm:$0x7] }
 0x11a   : > { %v1174_v14 = vrot.slane %v1173_v7, 1  ;;  %v1038_v15 = vrot.slane %v1037_v11, 1  ;;  %v1614_v34 = vmul.f32 %v2169_v33, %v1613_v19 }
 0x11c   : > { %v1175_v21 = vsel %vm701_vm6, %v1173_v7, %v1174_v14  ;;  %v1039_v16 = vsel %vm722_vm7, %v1037_v11, %v1038_v15  ;;  %1721 = vrot.lane.b32.xlu0 %v1719_v17, %s3210_s22  ;;  %v1615_v40 = vadd.f32 %v1614_v34, %v1611_v32  ;;  %v231_v11 = vld [vmem:[%s3174_s2] sm:$0xff] }
 0x11d   : > { %v1177_v12 = vadd.f32 %v1175_v21, %v1166_v42  ;;  %v890_v22 = vpop.permute.xlu1 %889  ;;  %v1041_v23 = vadd.f32 %v1039_v16, %v1030_v45  ;;  %1574 = vrot.lane.b32.xlu1 %v1572_v13, %s3210_s22  ;;  %v1475_v24 = vpop.permute.xlu0 %1474  ;;  %2063 = vmatprep.mubr.msk.f32.mxu1 %vm429_vm9, %v231_v11 }
 0x11e   : > { %v891_v26 = vrot.slane %v890_v22, 1  ;;  %v1476_v28 = vrot.slane %v1475_v24, 1 }
 0x120   : > { %v892_v62 = vsel %vm722_vm7, %v890_v22, %v891_v26  ;;  %v1477_v29 = vsel %vm680_vm5, %v1475_v24, %v1476_v28 }
 0x121   : > { %v894_v30 = vadd.f32 %v892_v62, %v885_v56  ;;  %v1330_v31 = vpop.permute.xlu1 %1329  ;;  %v1479_v35 = vadd.f32 %v1477_v29, %v1470_v59  ;;  %v1182_v36 = vpop.permute.xlu0 %1181  ;;  %1730 = vrot.lane.b32.xlu1 %v1728_v25, %s3210_s22  ;;  %s3119_s22 = scalar_lea.hbm %s3176_s4, %s2039_s14 }
 0x122   : > { %v1331_v18 = vrot.slane %v1330_v31, 1  ;;  %v1183_v37 = vrot.slane %v1182_v36, 1 }
 0x124   : > { %v1332_v39 = vsel %vm701_vm6, %v1330_v31, %v1331_v18  ;;  %v1184_v4 = vsel %vm701_vm6, %v1182_v36, %v1183_v37 }
 0x125   : > { %v1334_v8 = vadd.f32 %v1332_v39, %v1323_v6  ;;  %v1622_v41 = vpop.permute.xlu1 %1621  ;;  %v1186_v42 = vadd.f32 %v1184_v4, %v1177_v12  ;;  %v901_v38 = vpop.permute.xlu0 %900 }
 0x126   : > { %v1623_v44 = vrot.slane %v1622_v41, 1  ;;  %v902_v45 = vrot.slane %v901_v38, 7 }
 0x128   : > { %v1624_v9 = vsel %vm680_vm5, %v1622_v41, %v1623_v44  ;;  %v903_v46 = vsel %vm744_vm8, %v902_v45, %v901_v38 }
 0x129   : > { %v1626_v49 = vadd.f32 %v1624_v9, %v1615_v40  ;;  %v2886_v50 = vpop.permute.xlu1 %741  ;;  %v2888_v51 = vadd.f32 %v903_v46, %v894_v30  ;;  %v1339_v43 = vpop.permute.xlu0 %1338 }
 0x12a   : > { %v1340_v52 = vrot.slane %v1339_v43, 1 }
 0x12c   : > { %v1341_v53 = vsel %vm701_vm6, %v1339_v43, %v1340_v52 }
 0x12d   : > { %v1046_v54 = vpop.permute.xlu1 %1045  ;;  %v1343_v55 = vadd.f32 %v1341_v53, %v1334_v8  ;;  %v1631_v56 = vpop.permute.xlu0 %1630  ;;  %v743_v53 = vrot.slane %v2886_v50, 7 }
 0x12e   : > { %v1047_v58 = vrot.slane %v1046_v54, 1  ;;  %v1632_v59 = vrot.slane %v1631_v56, 1 }
 0x130   : > { %v1048_v60 = vsel %vm722_vm7, %v1046_v54, %v1047_v58  ;;  %v1633_v61 = vsel %vm680_vm5, %v1631_v56, %v1632_v59  ;;  %v745_v56 = vsel %vm744_vm8, %v743_v53, %v2886_v50  ;;  %vm1443_vm5 = vcmask 384000  }
 0x131   : > { %v1050_v63 = vadd.f32 %v1048_v60, %v1041_v23  ;;  %v1486_v0 = vpop.permute.xlu1 %1485  ;;  %v1635_v1 = vadd.f32 %v1633_v61, %v1626_v49  ;;  %v753_v2 = vpop.permute.xlu0 %752  ;;  %v747_v59 = vadd.f32 %v745_v56, %v2864_v10 }
 0x132   : > { %v1487_v3 = vrot.slane %v1486_v0, 1  ;;  %v754_v58 = vrot.slane %v753_v2, 7 }
 0x134   : > { %v1488_v48 = vsel %vm701_vm6, %v1486_v0, %v1487_v3 }
 0x135   : > { %v1490_v5 = vadd.f32 %v1488_v48, %v1479_v35  ;;  %v1194_v6 = vpop.permute.xlu1 %1193  ;;  %v1057_v7 = vpop.permute.xlu0 %1056 }
 0x136   : > { %v1195_v13 = vrot.slane %v1194_v6, 7  ;;  %v1058_v14 = vrot.slane %v1057_v7, 7 }
 0x138   : > { %v1196_v15 = vsel %vm722_vm7, %v1195_v13, %v1194_v6  ;;  %v1059_v17 = vsel %vm744_vm8, %v1058_v14, %v1057_v7 }
 0x139   : > { %v1198_v20 = vadd.f32 %v1196_v15, %v1186_v42  ;;  %v910_v21 = vpop.permute.xlu1 %909  ;;  %v2900_v16 = vadd.f32 %v1059_v17, %v1050_v63  ;;  %v1495_v12 = vpop.permute.xlu0 %1494  ;;  %v755_v63 = vsel %vm744_vm8, %v754_v58, %v753_v2 }
 0x13a   : > { %v1496_v22 = vrot.slane %v1495_v12, 1 }
 0x13c   : > { %v1497_v23 = vsel %vm701_vm6, %v1495_v12, %v1496_v22 }
 0x13d   : > { %v1350_v24 = vpop.permute.xlu1 %1349  ;;  %v1499_v25 = vadd.f32 %v1497_v23, %v1490_v5  ;;  %v1204_v26 = vpop.permute.xlu0 %1203  ;;  %v911_v5 = vrot.slane %v910_v21, 7 }
 0x13e   : > { %v1351_v27 = vrot.slane %v1350_v24, 7  ;;  %v1205_v19 = vrot.slane %v1204_v26, 7 }
 0x13f   : > { %v912_v10 = vsel %vm744_vm8, %v911_v5, %v910_v21 }
 0x140   : > { %v1352_v28 = vsel %vm722_vm7, %v1351_v27, %v1350_v24  ;;  %v1206_v62 = vsel %vm722_vm7, %v1205_v19, %v1204_v26  ;;  %v914_v17 = vadd.f32 %v912_v10, %v2888_v51  ;;  %v2948_v51 = vsub.s32 1, %v2489_v47 }
 0x141   : > { %v1354_v29 = vadd.f32 %v1352_v28, %v1343_v55  ;;  %v1642_v30 = vpop.permute.xlu1 %1641  ;;  %v2905_v31 = vadd.f32 %v1206_v62, %v1198_v20  ;;  %v921_v32 = vpop.permute.xlu0 %920 }
 0x142   : > { %v1643_v33 = vrot.slane %v1642_v30, 1  ;;  %v922_v14 = vrot.slane %v921_v32, 7 }
 0x144   : > { %v1644_v34 = vsel %vm701_vm6, %v1642_v30, %v1643_v33  ;;  %v923_v23 = vsel %vm766_vm10, %v922_v14, %v921_v32  ;;  %v2951_v33 = vsub.s32 0, %v2489_v47 }
 0x145   : > { %v1646_v35 = vadd.f32 %v1644_v34, %v1635_v1  ;;  %v764_v36 = vpop.permute.xlu1 %763  ;;  %v1359_v18 = vpop.permute.xlu0 %1358  ;;  %v757_v1 = vadd.f32 %v755_v63, %v747_v59  ;;  %v925_v26 = vadd.f32 %v923_v23, %v914_v17 }
 0x146   : > { %v1360_v37 = vrot.slane %v1359_v18, 7  ;;  %v765_v0 = vrot.slane %v764_v36, 7 }
 0x148   : > { %v1361_v39 = vsel %vm722_vm7, %v1360_v37, %v1359_v18  ;;  %v767_v6 = vsel %vm766_vm10, %v765_v0, %v764_v36  ;;  %v2957_v36 = vsub.s32 2, %v2489_v47 }
 0x149   : > { %v1066_v4 = vpop.permute.xlu1 %1065  ;;  %v2909_v8 = vadd.f32 %v1361_v39, %v1354_v29  ;;  %v1651_v40 = vpop.permute.xlu0 %1650  ;;  %v769_v50 = vadd.f32 %v767_v6, %v757_v1 }
 0x14a   : > { %v1652_v41 = vrot.slane %v1651_v40, 1  ;;  %v1067_v28 = vrot.slane %v1066_v4, 7 }
 0x14c   : > { %v1653_v42 = vsel %vm701_vm6, %v1651_v40, %v1652_v41  ;;  %v1068_v39 = vsel %vm744_vm8, %v1067_v28, %v1066_v4 }
 0x14d   : > { %v1506_v38 = vpop.permute.xlu1 %1505  ;;  %v2912_v44 = vadd.f32 %v1653_v42, %v1646_v35  ;;  %v774_v45 = vpop.permute.xlu0 %773 }
 0x14e   : > { %v1507_v9 = vrot.slane %v1506_v38, 7  ;;  %v775_v7 = vrot.slane %v774_v45, 7 }
 0x150   : > { %v1508_v46 = vsel %vm722_vm7, %v1507_v9, %v1506_v38  ;;  %v776_v15 = vsel %vm766_vm10, %v775_v7, %v774_v45  ;;  %v1070_v45 = vadd.f32 %v1068_v39, %v2900_v16 }
 0x151   : > { %v2915_v49 = vadd.f32 %v1508_v46, %v1499_v25  ;;  %v2917_v43 = vpop.permute.xlu1 %1214  ;;  %v2919_v52 = vpop.permute.xlu0 %1076  ;;  %v778_v20 = vadd.f32 %v776_v15, %v769_v50 }
 0x152   : > { %v1078_v40 = vrot.slane %v2919_v52, 7  ;;  %v1216_v9 = vrot.slane %v2917_v43, 7 }
 0x154   : > { %v1217_v63 = vsel %vm744_vm8, %v1216_v9, %v2917_v43 }
 0x155   : > { %v930_v54 = vpop.permute.xlu1 %929  ;;  %v2922_v55 = vpop.permute.xlu0 %1514 }
 0x156   : > { %v931_v24 = vrot.slane %v930_v54, 7  ;;  %v1516_v6 = vrot.slane %v2922_v55, 7 }
 0x158   : > { %v932_v62 = vsel %vm766_vm10, %v931_v24, %v930_v54  ;;  %v1079_v54 = vsel %vm766_vm10, %v1078_v40, %v2919_v52  ;;  %v1517_v24 = vsel %vm722_vm7, %v1516_v6, %v2922_v55 }
 0x159   : > { %v2927_v60 = vpop.permute.xlu1 %1369  ;;  %v2929_v61 = vpop.permute.xlu0 %1223  ;;  %v934_v34 = vadd.f32 %v932_v62, %v925_v26  ;;  %v1081_v0 = vadd.f32 %v1079_v54, %v1070_v45 }
 0x15a   : > { %v1371_v59 = vrot.slane %v2927_v60, 7  ;;  %v1225_v52 = vrot.slane %v2929_v61, 7 }
 0x15d   : > { %v2932_v3 = vpop.permute.xlu1 %1661  ;;  %v941_v48 = vpop.permute.xlu0 %940 }
 0x15e   : > { %v942_v29 = vrot.slane %v941_v48, 7  ;;  %v1663_v10 = vrot.slane %v2932_v3, 7 }
 0x160   : > { %v943_v41 = vsel %vm354_vm4, %v942_v29, %v941_v48 }
 0x161   : > { %v785_v11 = vpop.permute.xlu1 %784  ;;  %v2935_v13 = vpop.permute.xlu0 %1378  ;;  %v945_v46 = vadd.f32 %v943_v41, %v934_v34 }
 0x162   : > { %v786_v2 = vrot.slane %v785_v11, 7  ;;  %v1380_v15 = vrot.slane %v2935_v13, 7 }
 0x164   : > { %v787_v25 = vsel %vm354_vm4, %v786_v2, %v785_v11  ;;  %v1372_v11 = vsel %vm744_vm8, %v1371_v59, %v2927_v60  ;;  %v1219_v2 = vadd.f32 %v1217_v63, %v2905_v31  ;;  %v1664_v31 = vsel %vm722_vm7, %v1663_v10, %v2932_v3 }
 0x165   : > { %v1086_v12 = vpop.permute.xlu1 %1085  ;;  %v2940_v22 = vpop.permute.xlu0 %1670  ;;  %v789_v27 = vadd.f32 %v787_v25, %v778_v20  ;;  %v1374_v60 = vadd.f32 %v1372_v11, %v2909_v8  ;;  %v1226_v25 = vsel %vm744_vm8, %v1225_v52, %v2929_v61  ;;  %v1381_v8 = vsel %vm744_vm8, %v1380_v15, %v2935_v13 }
 0x166   : > { %v1087_v56 = vrot.slane %v1086_v12, 7  ;;  %v1672_v28 = vrot.slane %v2940_v22, 7  ;;  %v1666_v61 = vadd.f32 %v1664_v31, %v2912_v44  ;;  %v1228_v34 = vadd.f32 %v1226_v25, %v1219_v2 }
 0x167   : > { %v1383_v39 = vadd.f32 %v1381_v8, %v1374_v60 }
 0x168   : > { %v1088_v7 = vsel %vm766_vm10, %v1087_v56, %v1086_v12  ;;  %v1673_v13 = vsel %vm722_vm7, %v1672_v28, %v2940_v22  ;;  %vm1599_vm7 = vcmask 375808  }
 0x169   : > { %v2944_v19 = vpop.permute.xlu1 %1525  ;;  %v794_v21 = vpop.permute.xlu0 %793  ;;  %v1090_v17 = vadd.f32 %v1088_v7, %v1081_v0 }
 0x16a   : > { %v795_v30 = vrot.slane %v794_v21, 7 }
 0x16c   : > { %v796_v32 = vsel %vm354_vm4, %v795_v30, %v794_v21 }
 0x16d   : > { %v2954_v35 = vpop.permute.xlu1 %1234  ;;  %v798_v18 = vadd.f32 %v796_v32, %v789_v27  ;;  %v1097_v37 = vpop.permute.xlu0 %1096  ;;  %v1527_v27 = vrot.slane %v2944_v19, 7  ;;  %v1519_v32 = vadd.f32 %v1517_v24, %v2915_v49 }
 0x16e   : > { %v1098_v50 = vrot.slane %v1097_v37, 7  ;;  %v1236_v21 = vrot.slane %v2954_v35, 7 }
 0x16f   : > { %v807_v42 = vrot.slane %v798_v18, %v2948_v51  ;;  %v803_v38 = vrot.slane %v798_v18, %v2951_v33  ;;  %v811_v4 = vrot.slane %v798_v18, %v2957_v36  ;;  %v1528_v18 = vsel %vm744_vm8, %v1527_v27, %v2944_v19 }
 0x170   : > { %v1099_v26 = vsel %vm354_vm4, %v1098_v50, %v1097_v37  ;;  %v1237_v37 = vsel %vm766_vm10, %v1236_v21, %v2954_v35 }
 0x171   : > { %v950_v53 = vpop.permute.xlu1 %949  ;;  %v2966_v47 = vpop.permute.xlu0 %1534  ;;  %814 = vrot.lane.b32.xlu1 %v807_v42, %s2304_s29  ;;  %812 = vrot.lane.b32.xlu0 %v803_v38, %s2304_s29  ;;  %v1101_v29 = vadd.f32 %v1099_v26, %v1090_v17 }
 0x172   : > { %v951_v58 = vrot.slane %v950_v53, 7  ;;  %v1536_v41 = vrot.slane %v2966_v47, 7 }
 0x174   : > { %v952_v16 = vsel %vm354_vm4, %v951_v58, %v950_v53  ;;  %v1530_v53 = vadd.f32 %v1528_v18, %v1519_v32  ;;  %v1537_v56 = vsel %vm744_vm8, %v1536_v41, %v2966_v47 }
 0x175   : > { %v954_v1 = vadd.f32 %v952_v16, %v945_v46  ;;  %v1390_v48 = vpop.permute.xlu1 %1389  ;;  %v1244_v5 = vpop.permute.xlu0 %1243  ;;  %816 = vrot.lane.b32.xlu0 %v811_v4, %s2304_s29  ;;  %v1675_v46 = vadd.f32 %v1673_v13, %v1666_v61  ;;  %v1239_v4 = vadd.f32 %v1237_v37, %v1228_v34  ;;  %s2221_s29 = scalar_lea.vmem %s3121_s26, 1024 }
 0x176   : > { %v1391_v62 = vrot.slane %v1390_v48, 7  ;;  %v1245_v42 = vrot.slane %v1244_v5, 7  ;;  %v1539_v50 = vadd.f32 %v1537_v56, %v1530_v53  ;;  %p2222_p12 = scmp.ne.s32.totalorder %s3121_s26, %s2221_s29 }
 0x177   : > { %v959_v14 = vrot.slane %v954_v1, %v2951_v33  ;;  %v963_v43 = vrot.slane %v954_v1, %v2948_v51  ;;  %v967_v20 = vrot.slane %v954_v1, %v2957_v36 }
 0x178   : > { %v1392_v49 = vsel %vm766_vm10, %v1391_v62, %v1390_v48  ;;  %v1246_v58 = vsel %vm766_vm10, %v1245_v42, %v1244_v5  ;;  %p2223_p2 = pnand %p2222_p12, %p3212_p0 }
 0x179   : > { %v1682_v12 = vpop.permute.xlu1 %1681  ;;  %v1399_v23 = vpop.permute.xlu0 %1398  ;;  %968 = vrot.lane.b32.xlu1 %v959_v14, %s2305_s30  ;;  %970 = vrot.lane.b32.xlu0 %v963_v43, %s2305_s30  ;;  %v1394_v22 = vadd.f32 %v1392_v49, %v1383_v39  ;;  %v1248_v11 = vadd.f32 %v1246_v58, %v1239_v4 }
 0x17a   : > { %v1400_v44 = vrot.slane %v1399_v23, 7  ;;  %v1683_v19 = vrot.slane %v1682_v12, 7  ;;  %p2224_p7 = pneg %p2223_p2 }
 0x17c   : > { %v1401_v59 = vsel %vm766_vm10, %v1400_v44, %v1399_v23  ;;  %v1684_v7 = vsel %vm744_vm8, %v1683_v19, %v1682_v12 }
 0x17d   : > { %v1106_v55 = vpop.permute.xlu1 %1105  ;;  %v1691_v30 = vpop.permute.xlu0 %1690  ;;  %972 = vrot.lane.b32.xlu1 %v967_v20, %s2305_s30  ;;  %v1403_v47 = vadd.f32 %v1401_v59, %v1394_v22  ;;  %v1686_v10 = vadd.f32 %v1684_v7, %v1675_v46  ;;  %s2310_s30 = smov [#allocation9]  }
 0x17e   : > { %v1107_v3 = vrot.slane %v1106_v55, 7  ;;  %v1692_v1 = vrot.slane %v1691_v30, 7 }
 0x180   : > { %v1108_v40 = vsel %vm354_vm4, %v1107_v3, %v1106_v55  ;;  %v1693_v43 = vsel %vm744_vm8, %v1692_v1, %v1691_v30 }
 0x181   : > { %v1110_v38 = vadd.f32 %v1108_v40, %v1101_v29  ;;  %v1546_v45 = vpop.permute.xlu1 %1545  ;;  %v1410_v9 = vpop.permute.xlu0 %1409  ;;  %v1695_v26 = vadd.f32 %v1693_v43, %v1686_v10 }
 0x182   : > { %v1547_v63 = vrot.slane %v1546_v45, 7  ;;  %v1411_v48 = vrot.slane %v1410_v9, 7 }
 0x183   : > { %v1119_v35 = vrot.slane %v1110_v38, %v2948_v51  ;;  %v1115_v54 = vrot.slane %v1110_v38, %v2951_v33  ;;  %v1123_v16 = vrot.slane %v1110_v38, %v2957_v36 }
 0x184   : > { %v1548_v5 = vsel %vm766_vm10, %v1547_v63, %v1546_v45  ;;  %v1412_v15 = vsel %vm354_vm4, %v1411_v48, %v1410_v9 }
 0x185   : > { %v1255_v0 = vpop.permute.xlu1 %1254  ;;  %v1702_v6 = vpop.permute.xlu0 %1701  ;;  %1126 = vrot.lane.b32.xlu1 %v1119_v35, %s2306_s12  ;;  %1124 = vrot.lane.b32.xlu0 %v1115_v54, %s2306_s12  ;;  %v1414_v12 = vadd.f32 %v1412_v15, %v1403_v47  ;;  %v1550_v24 = vadd.f32 %v1548_v5, %v1539_v50  ;;  %v234_v47 = vld [vmem:[%s3174_s2 + $0x18] sm:$0xff] }
 0x186   : > { %v1256_v52 = vrot.slane %v1255_v0, 7  ;;  %v1703_v23 = vrot.slane %v1702_v6, 7 }
 0x188   : > { %v1257_v17 = vsel %vm354_vm4, %v1256_v52, %v1255_v0  ;;  %v1704_v62 = vsel %vm766_vm10, %v1703_v23, %v1702_v6 }
 0x189   : > { %v1555_v14 = vpop.permute.xlu1 %1554  ;;  %v1419_v2 = vpop.permute.xlu0 %1418  ;;  %1128 = vrot.lane.b32.xlu0 %v1123_v16, %s2306_s12  ;;  %v1259_v25 = vadd.f32 %v1257_v17, %v1248_v11  ;;  %v1706_v34 = vadd.f32 %v1704_v62, %v1695_v26  ;;  %s2225_s12 = sshll.u32 %s2310_s30, 4  ;;  %s2226_s12 = int_to_ptr.vmem [resolvable:$false] %s2225_s12 }
 0x18a   : > { %v1556_v20 = vrot.slane %v1555_v14, 7  ;;  %v1420_v60 = vrot.slane %v1419_v2, 7  ;;  %p2228_p8 = scmp.lt.s32.totalorder %s3121_s26, %s2226_s12 }
 0x18c   : > { %v1421_v27 = vsel %vm354_vm4, %v1420_v60, %v1419_v2  ;;  %v1557_v28 = vsel %vm766_vm10, %v1556_v20, %v1555_v14 }
 0x18d   : > { %v1264_v31 = vpop.permute.xlu1 %1263  ;;  %v1711_v21 = vpop.permute.xlu0 %1710  ;;  %v1423_v30 = vadd.f32 %v1421_v27, %v1414_v12  ;;  %v1559_v61 = vadd.f32 %v1557_v28, %v1550_v24 }
 0x18e   : > { %v1265_v8 = vrot.slane %v1264_v31, 7  ;;  %v1712_v29 = vrot.slane %v1711_v21, 7 }
 0x18f   : > { %v1428_v44 = vrot.slane %v1423_v30, %v2951_v33  ;;  %v1432_v53 = vrot.slane %v1423_v30, %v2948_v51  ;;  %v1436_v35 = vrot.slane %v1423_v30, %v2957_v36 }
 0x190   : > { %v1266_v55 = vsel %vm354_vm4, %v1265_v8, %v1264_v31  ;;  %v1713_v39 = vsel %vm766_vm10, %v1712_v29, %v1711_v21  ;;  %v237_v29 = vadd.s32 128, %v2605_v57 }
 0x191   : > { %v1268_v32 = vadd.f32 %v1266_v55, %v1259_v25  ;;  %v1566_v3 = vpop.permute.xlu1 %1565  ;;  %v1722_v18 = vpop.permute.xlu0 %1721  ;;  %v1715_v9 = vadd.f32 %v1713_v39, %v1706_v34  ;;  %v3064_v55 = vand.u32 15, %v2605_v57 }
 0x192   : > { %v1567_v37 = vrot.slane %v1566_v3, 7  ;;  %v1723_v13 = vrot.slane %v1722_v18, 7 }
 0x193   : > { %v1273_v40 = vrot.slane %v1268_v32, %v2951_v33  ;;  %v1277_v41 = vrot.slane %v1268_v32, %v2948_v51  ;;  %v1281_v49 = vrot.slane %v1268_v32, %v2957_v36  ;;  %vm262_vm14 = vcmp.ge.s32.totalorder %v3064_v55, 3 }
 0x194   : > { %v1568_v42 = vsel %vm354_vm4, %v1567_v37, %v1566_v3  ;;  %v1724_v19 = vsel %vm354_vm4, %v1723_v13, %v1722_v18  ;;  %vm268_vm15 = vcmp.ge.s32.totalorder %v3064_v55, 2  ;;  %vm274_vm3 = vcmp.ge.s32.totalorder %v3064_v55, 1 }
 0x195   : > { %v1570_v38 = vadd.f32 %v1568_v42, %v1559_v61  ;;  %1282 = vrot.lane.b32.xlu1 %v1273_v40, %s3209_s9  ;;  %v1575_v45 = vpop.permute.xlu1 %1574  ;;  %1284 = vrot.lane.b32.xlu0 %v1277_v41, %s3209_s9  ;;  %v1726_v22 = vadd.f32 %v1724_v19, %v1715_v9  ;;  %v3066_v61 = vand.u32 15, %v237_v29  ;;  %vm288_vm6 = vcmp.lt.s32.totalorder %v3064_v55, 15 }
 0x196   : > { %v1576_v46 = vrot.slane %v1575_v45, 7 }
 0x197   : > { %vm263_vm1 = vcmp.ge.s32.totalorder %v3066_v61, 3  ;;  %vm269_vm2 = vcmp.ge.s32.totalorder %v3066_v61, 2  ;;  %vm289_vm8 = vcmp.lt.s32.totalorder %v3066_v61, 15 }
 0x198   : > { %v1577_v4 = vsel %vm354_vm4, %v1576_v46, %v1575_v45 }
 0x199   : > { %v1579_v54 = vadd.f32 %v1577_v4, %v1570_v38  ;;  %1286 = vrot.lane.b32.xlu1 %v1281_v49, %s3209_s9  ;;  %1437 = vrot.lane.b32.xlu0 %v1428_v44, %s2307_s7  ;;  %v1731_v56 = vpop.permute.xlu1 %1730  ;;  %s2308_s9 = smov 46  }
 0x19a   : > { %v1732_v58 = vrot.slane %v1731_v56, 7 }
 0x19b   : > { %v1584_v16 = vrot.slane %v1579_v54, %v2951_v33  ;;  %v1588_v63 = vrot.slane %v1579_v54, %v2948_v51  ;;  %v1592_v6 = vrot.slane %v1579_v54, %v2957_v36 }
 0x19c   : > { %v1733_v59 = vsel %vm354_vm4, %v1732_v58, %v1731_v56  ;;  %vm275_vm4 = vcmp.ge.s32.totalorder %v3066_v61, 1 }
 0x19d   : > { %1439 = vrot.lane.b32.xlu1 %v1432_v53, %s2307_s7  ;;  %1441 = vrot.lane.b32.xlu0 %v1436_v35, %s2307_s7  ;;  %v1735_v0 = vadd.f32 %v1733_v59, %v1726_v22  ;;  %s2227_s7 = scalar_lea.vmem %s2226_s12, 2048 }
 0x19e   : > { %p2229_p9 = scmp.lt.s32.totalorder %s2227_s7, %s2221_s29 }
 0x19f   : > { %v1744_v1 = vrot.slane %v1735_v0, %v2948_v51  ;;  %v1748_v48 = vrot.slane %v1735_v0, %v2957_v36  ;;  %v1740_v7 = vrot.slane %v1735_v0, %v2951_v33  ;;  %v232_v51 = vld [vmem:[%s3174_s2 + $0x8] sm:$0xff]  ;;  %v233_v36 = vld [vmem:[%s3174_s2 + $0x10] sm:$0xff] }
 0x1a0   : > { %p2230_p10 = por %p2229_p9, %p2228_p8 }
 0x1a1   : > { %1593 = vrot.lane.b32.xlu1 %v1584_v16, %s2308_s9  ;;  %1595 = vrot.lane.b32.xlu0 %v1588_v63, %s2308_s9 }
 0x1a2   : > { %p2231_p1 = pnand %p2230_p10, %p2224_p7 }
 0x1a5   : > { %1597 = vrot.lane.b32.xlu1 %v1592_v6, %s2308_s9  ;;  %1749 = vrot.lane.b32.xlu0 %v1740_v7, %s2309_s1 }
 0x1b2   : > { %v424_v52 = vpop.f32.mrf.mxu0 }
 0x1b3   : > { %v428_v50 = vmax.f32 %v424_v52, 0.0 }
 0x1b4   : > { %v2060_v11 = vpop.f32.mrf.mxu0 }
 0x1b5   : > { %2061 = vmatprep.subr.msk.mxu1 %vm442_vm11, %v428_v50 }
 0x1b6   : > { %2062 = vmatpush3.msk.msra.mxu1 %vm442_vm11, %v428_v50  ;;  %vm295_vm11 = vcmp.lt.s32.totalorder %v3066_v61, 14 }
 0x1b7   : > { %2064 = vmatmul.mubr.msk.f32.vlgmr.msra.gmra.mxu1 %vm429_vm9, %v232_v51 }
 0x1b8   : > { %2066 = vmatprep.mubr.msk.f32.mxu1 %vm429_vm9, %v233_v36 }
 0x1bb   : > { %2067 = vmatmul.mubr.msk.f32.gmra.mxu1 %vm429_vm9, %v234_v47 }
 0x1e3   : > { %v813_v23 = vpop.permute.xlu0 %812  ;;  %v815_v60 = vpop.permute.xlu1 %814 }
 0x1e4   : > { %v819_v34 = vsel %vm818_vm12, %v813_v23, %v815_v60 }
 0x1e5   : > { %v823_v39 = vsel %vm262_vm14, %v819_v34, 0.0 }
 0x1e7   : > { %v817_v12 = vpop.permute.xlu0 %816 }
 0x1e8   : > { %v820_v18 = vsel %vm818_vm12, %v815_v60, %v817_v12  ;;  %vm1755_vm12 = vcmask 367616  }
 0x1e9   : > { %v824_v42 = vsel %vm263_vm1, %v820_v18, 0.0 }
 0x1eb   : > { %v969_v24 = vpop.permute.xlu1 %968  ;;  %v971_v25 = vpop.permute.xlu0 %970 }
 0x1ec   : > { %v975_v3 = vsel %vm974_vm13, %v969_v24, %v971_v25 }
 0x1ed   : > { %v979_v13 = vsel %vm268_vm15, %v975_v3, 0.0 }
 0x1ee   : > { %v981_v49 = vadd.f32 %v979_v13, %v823_v39 }
 0x1ef   : > { %v973_v26 = vpop.permute.xlu1 %972 }
 0x1f0   : > { %v976_v57 = vsel %vm974_vm13, %v971_v25, %v973_v26  ;;  %vm301_vm13 = vcmp.lt.s32.totalorder %v3066_v61, 13 }
 0x1f1   : > { %v980_v44 = vsel %vm269_vm2, %v976_v57, 0.0 }
 0x1f2   : > { %v982_v9 = vadd.f32 %v980_v44, %v824_v42 }
 0x1f7   : > { %v1125_v31 = vpop.permute.xlu0 %1124  ;;  %v1127_v27 = vpop.permute.xlu1 %1126 }
 0x1f8   : > { %v1131_v40 = vsel %vm1130_vm0, %v1125_v31, %v1127_v27 }
 0x1f9   : > { %v1135_v45 = vsel %vm274_vm3, %v1131_v40, 0.0 }
 0x1fa   : > { %v1137_v53 = vadd.f32 %v1135_v45, %v981_v49 }
 0x1fb   : > { %v1129_v21 = vpop.permute.xlu0 %1128 }
 0x1fc   : > { %v1132_v38 = vsel %vm1130_vm0, %v1127_v27, %v1129_v21 }
 0x1fd   : > { %v1136_v19 = vsel %vm275_vm4, %v1132_v38, 0.0 }
 0x1fe   : > { %v1138_v54 = vadd.f32 %v1136_v19, %v982_v9 }
 0x207   : > { %v1283_v28 = vpop.permute.xlu1 %1282  ;;  %v1285_v8 = vpop.permute.xlu0 %1284 }
 0x208   : > { %v1288_v35 = vsel %vm766_vm10, %v1283_v28, %v1285_v8 }
 0x209   : > { %v1294_v59 = vadd.f32 %v1288_v35, %v1137_v53 }
 0x20b   : > { %v1287_v62 = vpop.permute.xlu1 %1286  ;;  %v1438_v30 = vpop.permute.xlu0 %1437 }
 0x20c   : > { %v1289_v58 = vsel %vm766_vm10, %v1285_v8, %v1287_v62  ;;  %vm300_vm10 = vcmp.lt.s32.totalorder %v3064_v55, 13 }
 0x20f   : > { %v1440_v32 = vpop.permute.xlu1 %1439  ;;  %v1442_v37 = vpop.permute.xlu0 %1441 }
 0x210   : > { %v1444_v22 = vsel %vm1443_vm5, %v1438_v30, %v1440_v32  ;;  %v1445_v16 = vsel %vm1443_vm5, %v1440_v32, %v1442_v37 }
 0x211   : > { %v1448_v0 = vsel %vm288_vm6, %v1444_v22, 0.0  ;;  %v1449_v52 = vsel %vm289_vm8, %v1445_v16, 0.0 }
 0x212   : > { %v1450_v36 = vadd.f32 %v1448_v0, %v1294_v59 }
 0x213   : > { %v1594_v41 = vpop.permute.xlu1 %1593  ;;  %v1596_v46 = vpop.permute.xlu0 %1595 }
 0x214   : > { %v1600_v6 = vsel %vm1599_vm7, %v1594_v41, %v1596_v46 }
 0x217   : > { %v1598_v4 = vpop.permute.xlu1 %1597  ;;  %v1750_v56 = vpop.permute.xlu0 %1749 }
 0x218   : > { %v1601_v50 = vsel %vm1599_vm7, %v1596_v46, %v1598_v4 }
 0x277   : > { %v2065_v10 = vpop.f32.mrf.mxu1 }
 0x278   : > { %v534_v5 = vsel %vm429_vm9, %v2065_v10, 0.0 }
 0x279   : > { %535 = vadd.xlane.f32.xlu1 %v534_v5  ;;  %v512_v14 = vpop.f32.mrf.mxu1 }
 0x27a   : > { %v531_v43 = vsel %vm429_vm9, %v512_v14, 0.0 }
 0x27b   : > { %532 = vadd.xlane.f32.xlu0 %v531_v43  ;;  %v2068_v15 = vpop.f32.mrf.mxu1 }
 0x27c   : > { %v540_v2 = vsel %vm429_vm9, %v2068_v15, 0.0 }
 0x27d   : > { %541 = vadd.xlane.f32.xlu1 %v540_v2  ;;  %v522_v17 = vpop.f32.mrf.mxu1  ;;  %v1605_v2 = vsel %vm295_vm11, %v1601_v50, 0.0 }
 0x27e   : > { %v537_v20 = vsel %vm429_vm9, %v522_v17, 0.0  ;;  %vm294_vm9 = vcmp.lt.s32.totalorder %v3064_v55, 14 }
 0x27f   : > { %538 = vadd.xlane.f32.xlu0 %v537_v20  ;;  %v1604_v10 = vsel %vm294_vm9, %v1600_v6, 0.0 }
 0x280   : > { %v1606_v12 = vadd.f32 %v1604_v10, %v1450_v36 }
 0x28e   : > { %1751 = vrot.lane.b32.xlu1 %v1744_v1, %s2309_s1 }
 0x295   : > { %1753 = vrot.lane.b32.xlu0 %v1748_v48, %s2309_s1  ;;  %v1295_v48 = vadd.f32 %v1289_v58, %v1138_v54 }
 0x297   : > { %v1451_v15 = vadd.f32 %v1449_v52, %v1295_v48 }
 0x299   : > { %v1607_v27 = vadd.f32 %v1605_v2, %v1451_v15 }
 0x302   : > { %v3078_v63 = vpop.xlane.xlu1 %535 }
 0x303   : > { %v544_v1 = vand.u32 2147483647, %v3078_v63  ;;  %vm572_vm14 = vcmp.ge.f32.partialorder %v3078_v63, 0.0 }
 0x304   : > { %v3083_v7 = vpop.xlane.xlu0 %532 }
 0x305   : > { %v548_v11 = vsub.f32 0.0, %v544_v1  ;;  %v543_v51 = vand.u32 2147483647, %v3083_v7  ;;  %vm571_vm15 = vcmp.ge.f32.partialorder %v3083_v7, 0.0 }
 0x306   : > { %v3086_v47 = vpop.xlane.xlu1 %541 }
 0x307   : > { %v553_v5 = vmul.f32 1.442695, %v548_v11  ;;  %v547_v14 = vsub.f32 0.0, %v543_v51  ;;  %v546_v43 = vand.u32 2147483647, %v3086_v47  ;;  %vm574_vm0 = vcmp.ge.f32.partialorder %v3086_v47, 0.0 }
 0x308   : > { %v3089_v17 = vpop.xlane.xlu0 %538 }
 0x309   : > { %2145 = vpow2.f32 %v553_v5  ;;  %v551_v20 = vmul.f32 1.442695, %v547_v14  ;;  %v550_v23 = vsub.f32 0.0, %v546_v43  ;;  %v545_v60 = vand.u32 2147483647, %v3089_v17 }
 0x30a   : > { %v1752_v24 = vpop.permute.xlu1 %1751  ;;  %vm573_vm1 = vcmp.ge.f32.partialorder %v3089_v17, 0.0  ;;  %v2170_v17 = vld [vmem:[%s2464_s11] sm:$0xff] }
 0x30b   : > { %2147 = vpow2.f32 %v551_v20  ;;  %v557_v25 = vmul.f32 1.442695, %v550_v23  ;;  %v549_v26 = vsub.f32 0.0, %v545_v60  ;;  %v1756_v31 = vsel %vm1755_vm12, %v1750_v56, %v1752_v24  ;;  %v2171_v23 = vld [vmem:[%s2464_s11 + $0x10] sm:$0xff] }
 0x30c   : > { %v1760_v21 = vsel %vm300_vm10, %v1756_v31, 0.0  ;;  %v1754_v28 = vpop.permute.xlu0 %1753 }
 0x30d   : > { %2149 = vpow2.f32 %v557_v25  ;;  %v555_v8 = vmul.f32 1.442695, %v549_v26  ;;  %v1762_v62 = vadd.f32 %v1760_v21, %v1606_v12  ;;  %v1757_v29 = vsel %vm1755_vm12, %v1752_v24, %v1754_v28  ;;  %v2172_v12 = vld [vmem:[%s2464_s11 + $0x20] sm:$0xff]  ;;  %v2173_v25 = vld [vmem:[%s2464_s11 + $0x30] sm:$0xff]  ;;  %v2174_v28 = vld [vmem:[%s2464_s11 + $0x8] sm:$0xff] }
 0x30e   : > { %v1761_v55 = vsel %vm301_vm13, %v1757_v29, 0.0 }
 0x30f   : > { %2151 = vpow2.f32 %v555_v8  ;;  %v1764_v30 = vand.u32 2147483647, %v1762_v62  ;;  %v1763_v32 = vadd.f32 %v1761_v55, %v1607_v27  ;;  %vm1778_vm2 = vcmp.ge.f32.partialorder %v1762_v62, 0.0  ;;  %v2175_v62 = vld [vmem:[%s2464_s11 + $0x18] sm:$0xff]  ;;  %v2176_v55 = vld [vmem:[%s2464_s11 + $0x28] sm:$0xff] }
 0x311   : > { %v1766_v34 = vsub.f32 0.0, %v1764_v30  ;;  %v1765_v3 = vand.u32 2147483647, %v1763_v32  ;;  %vm1779_vm3 = vcmp.ge.f32.partialorder %v1763_v32, 0.0  ;;  %v2177_v32 = vld [vmem:[%s2464_s11 + $0x38] sm:$0xff] }
 0x313   : > { %v1768_v61 = vmul.f32 1.442695, %v1766_v34  ;;  %v1767_v18 = vsub.f32 0.0, %v1765_v3 }
 0x315   : > { %2153 = vpow2.f32 %v1768_v61  ;;  %v1770_v57 = vmul.f32 1.442695, %v1767_v18 }
 0x316   : > { %v2146_v37 = vpop.eup %2145 }
 0x317   : > { %2155 = vpow2.f32 %v1770_v57  ;;  %v560_v13 = vadd.f32 1.0, %v2146_v37 }
 0x318   : > { %v2148_v39 = vpop.eup %2147 }
 0x319   : > { %v559_v40 = vadd.f32 1.0, %v2148_v39  ;;  %2157 = vrcp.f32 %v560_v13 }
 0x31a   : > { %v2150_v41 = vpop.eup %2149 }
 0x31b   : > { %v562_v42 = vadd.f32 1.0, %v2150_v41  ;;  %2159 = vrcp.f32 %v559_v40 }
 0x31c   : > { %v2152_v44 = vpop.eup %2151 }
 0x31d   : > { %v561_v49 = vadd.f32 1.0, %v2152_v44  ;;  %2161 = vrcp.f32 %v562_v42 }
 0x31f   : > { %2163 = vrcp.f32 %v561_v49 }
 0x322   : > { %v2154_v38 = vpop.eup %2153 }
 0x323   : > { %v1772_v45 = vadd.f32 1.0, %v2154_v38 }
 0x324   : > { %v2156_v9 = vpop.eup %2155 }
 0x325   : > { %2165 = vrcp.f32 %v1772_v45  ;;  %v1773_v46 = vadd.f32 1.0, %v2156_v9 }
 0x326   : > { %v2158_v19 = vpop.eup %2157 }
 0x327   : > { %2167 = vrcp.f32 %v1773_v46  ;;  %v576_v54 = vmul.f32 %v2158_v19, %v2146_v37 }
 0x328   : > { %v2160_v53 = vpop.eup %2159 }
 0x329   : > { %v575_v22 = vmul.f32 %v2160_v53, %v2148_v39  ;;  %v580_v16 = vsel %vm572_vm14, %v2158_v19, %v576_v54 }
 0x32a   : > { %v2162_v4 = vpop.eup %2161  ;;  %v1785_v50 = vadd.f32 2.0, %v580_v16 }
 0x32b   : > { %v578_v56 = vmul.f32 %v2162_v4, %v2150_v41  ;;  %v579_v0 = vsel %vm571_vm15, %v2160_v53, %v575_v22 }
 0x32c   : > { %v2164_v35 = vpop.eup %2163  ;;  %v1784_v51 = vadd.f32 2.0, %v579_v0 }
 0x32d   : > { %v577_v58 = vmul.f32 %v2164_v35, %v2152_v44  ;;  %v582_v1 = vsel %vm574_vm0, %v2162_v4, %v578_v56 }
 0x32e   : > { %v1787_v7 = vadd.f32 2.0, %v582_v1 }
 0x32f   : > { %v581_v48 = vsel %vm573_vm1, %v2164_v35, %v577_v58 }
 0x330   : > { %v1786_v36 = vadd.f32 2.0, %v581_v48 }
 0x332   : > { %v2166_v59 = vpop.eup %2165 }
 0x333   : > { %v1780_v6 = vmul.f32 %v2166_v59, %v2154_v38 }
 0x334   : > { %v2168_v52 = vpop.eup %2167 }
 0x335   : > { %v1782_v11 = vsel %vm1778_vm2, %v2166_v59, %v1780_v6  ;;  %v1781_v63 = vmul.f32 %v2168_v52, %v2156_v9 }
 0x336   : > { %v1791_v47 = vrot.slane %v1782_v11, %v2951_v33 }
 0x337   : > { %v1783_v10 = vsel %vm1779_vm3, %v2168_v52, %v1781_v63 }
 0x338   : > { %v1796_v5 = vadd.f32 %v1791_v47, %v1784_v51  ;;  %v1798_v14 = vadd.f32 %v1791_v47, %v1785_v50  ;;  %v1800_v43 = vadd.f32 %v1791_v47, %v1786_v36  ;;  %v1802_v15 = vadd.f32 %v1791_v47, %v1787_v7 }
 0x339   : > { %v1795_v2 = vrot.slane %v1783_v10, %v2951_v33 }
 0x33a   : > { %v1804_v20 = vmul.f32 %v2170_v17, %v1796_v5  ;;  %v1806_v60 = vmul.f32 %v2171_v23, %v1798_v14  ;;  %v1808_v24 = vmul.f32 %v2172_v12, %v1800_v43  ;;  %v1810_v33 = vmul.f32 %v2173_v25, %v1802_v15 }
 0x33b   : > { %v1797_v26 = vadd.f32 %v1795_v2, %v1784_v51  ;;  %v1799_v31 = vadd.f32 %v1795_v2, %v1785_v50  ;;  %v1801_v27 = vadd.f32 %v1795_v2, %v1786_v36  ;;  %v1803_v21 = vadd.f32 %v1795_v2, %v1787_v7 }
 0x33c   : > { %1812 = vst [vmem:[%s3105_s3] sm:$0xff] %v1804_v20  ;;  %1814 = vst [vmem:[%s3105_s3 + $0x10] sm:$0xff] %v1806_v60 }
 0x33d   : > { %1816 = vst [vmem:[%s3105_s3 + $0x20] sm:$0xff] %v1808_v24  ;;  %1818 = vst [vmem:[%s3105_s3 + $0x30] sm:$0xff] %v1810_v33  ;;  %v1805_v8 = vmul.f32 %v2174_v28, %v1797_v26  ;;  %v1807_v29 = vmul.f32 %v2175_v62, %v1799_v31  ;;  %v1809_v30 = vmul.f32 %v2176_v55, %v1801_v27 }
 0x33e   : > { %v1811_v34 = vmul.f32 %v2177_v32, %v1803_v21 }
 0x33f   : > { %1813 = vst [vmem:[%s3105_s3 + $0x8] sm:$0xff] %v1805_v8  ;;  %1815 = vst [vmem:[%s3105_s3 + $0x18] sm:$0xff] %v1807_v29 }
 0x340   : > { %1817 = vst [vmem:[%s3105_s3 + $0x28] sm:$0xff] %v1809_v30  ;;  %1819 = vst [vmem:[%s3105_s3 + $0x38] sm:$0xff] %v1811_v34 }
 0x341   : > { %2234 = shalt.err (!%p2231_p1)
}
 0x342   : > { %s2235_s11 = scalar_lea.hbm %s3119_s22, 1024  ;;  %s2239_s24 = scalar_lea.hbm %s3176_s4, 2048 }
 0x343   : > { %p2236_p4 = scmp.ne.s32.totalorder %s3119_s22, %s2235_s11  ;;  %p2240_p6 = scmp.lt.s32.totalorder %s3119_s22, %s3176_s4 }
 0x344   : > { %p2241_p13 = scmp.lt.s32.totalorder %s2239_s24, %s2235_s11 }
 0x345   : > { %p2237_p11 = pnand %p2236_p4, %p3212_p0 }
 0x346   : > { %p2242_p3 = por %p2241_p13, %p2240_p6 }
 0x347   : > { %p2238_p5 = pneg %p2237_p11 }
 0x349   : > { %p2243_p12 = pnand %p2242_p3, %p2238_p5 }
 0x34b   : > { %2246 = shalt.err (!%p2243_p12)
}
 0x34c   : > { %s2311_s10 = smov 256   ;;  %s2312_s25 = smov 16  }
 0x34d   : > { %2075 = dma.vmem_to_hbm [thread:$0]  (%p3212_p0), %s3121_s26, 1024, %s3119_s22, %s1821_s20, %s2311_s10, %s2311_s10, %s2312_s25  }
 0x34e PF: > { %s1849_s5 = sand.u32 1, %s2277_s15   ;;  %p3213_p2 = scmp.ne.s32.totalorder %s3196_s28, 0 }
 0x34f   : > { %p3214_p7 = scmp.ge.s32.totalorder %s2289_s18, 2  ;;  %s1850_s14 = scalar_lea.sflag [#allocation6], %s1849_s5 }
 0x351   : > { %p2086_p8 = pnand %p3214_p7, %p3213_p2 }
 0x353   : > { %p2087_p9 = pneg %p2086_p8 }
 0x355   : > { %2272 = dma.done.wait (%p2087_p9), %s1850_s14, 1024  }
 0x356   : > { %2274 = vsyncadd (%p2087_p9), %s1850_s14, 4294966272  ;;  %s3215_s0 = sld [smem:[#allocation13_spill]]  ;;  %p18_p10 = scmp.ge.s32.totalorder %s2363_s21, 4  }
 0x357   : > { %s3216_s15 = smov %s2281_s16  ;;  %s3217_s16 = smov %s2285_s17 }
 0x358   : > { %s3219_s18 = smov %s2363_s21  ;;  %20 = sbr.rel (!%p18_p10) target bundleno = 10 (0xa), region = 86 }
 0x35c   : > { %s3218_s17 = smov %s3215_s0 }
 0x35d   :  { %1855 = vsyncpa [#allocation5], 1 }
 0x35e   :  { %1857 = vsyncpa [#allocation5 + $0x1], 1 }
 0x35f   :  { %1858 = vsyncpa [#allocation6], 1 }
 0x360   :  { %1860 = vsyncpa [#allocation6 + $0x1], 1 }
 0x361   :  { %1861 = vsyncpa [#allocation7], 1 }
 0x362   :  { %1863 = vsyncpa [#allocation7 + $0x1], 1 }

</bundles_post_ra>
